<compile_context>
chip_gen: v7x
topology: tpu7x:2x2x1
jax: 0.10.0
libtpu: 0.0.40
codegen_flags: <defaults>
</compile_context>

<pallas_src>
import functools
import math

import jax
import jax.numpy as jnp
from jax import lax
from jax.experimental import pallas as pl
from jax.experimental.pallas import tpu as pltpu

CONF_THRES = 0.4
IOU_THRES = 0.45
MAX_DET = 1000
MAX_WH = 4096.0          # class offset used by yolov5 class-aware NMS
STRIDE = 1.0
ANCHOR_W = 4.0
ANCHOR_H = 4.0
NC = 4                   # number of classes in the synthetic head
NMS_CAP = 1024           # candidate cap for NMS (multiple of 128; 8x128 tiles)
_OBJ_LOGIT_THRES = math.log(CONF_THRES / (1.0 - CONF_THRES))   # logit(0.4)


def _pick_tm(m):
    # Prefer big row tiles: at tm=512 each grid step moves ~22 KB while paying
    # ~0.35us of per-step pipeline overhead; 1024-2048 gets near the HBM
    # roofline.  Live intermediates are ~25*tm f32, so tm=2048 stays well under
    # the scoped-VMEM default on every generation (<1 MiB).
    for tm in (2048, 1024, 512, 256, 128):
        if m % tm == 0:
            return tm
    return m


# ---------- kernel 1: fused backbone/head 1x1 convs + YOLO decode -----------
def _fused_yolo_kernel(x_ref, w1_ref, b1_ref, w2_ref, b2_ref, wh_ref, bh_ref,
                       out_ref, *, img_w, tm):
    # chained tiny matmuls: (8,3)@(3,TM) -> (16,8)@(8,TM) -> (9,16)@(16,TM)
    h1 = jnp.dot(w1_ref[...], x_ref[...], preferred_element_type=jnp.float32)
    h1 = h1 + b1_ref[...]
    h1 = h1 * jax.nn.sigmoid(h1)                                  # SiLU
    h2 = jnp.dot(w2_ref[...], h1, preferred_element_type=jnp.float32)
    h2 = h2 + b2_ref[...]
    h2 = h2 * jax.nn.sigmoid(h2)
    raw = jnp.dot(wh_ref[...], h2, preferred_element_type=jnp.float32)
    raw = raw + bh_ref[...]                                       # (5+NC, TM) logits

    # Class max/argmax on pre-sigmoid logits (sigmoid is monotone, so max and
    # first-occurrence argmax commute); only the winning class score is
    # sigmoided.  Objectness confidence test is done in logit space.
    box = jax.nn.sigmoid(raw[0:4, :])                             # 4 sigmoids
    obj_logit = raw[4:5, :]
    obj = jax.nn.sigmoid(obj_logit)                               # 1 sigmoid
    cls_logits = raw[5:, :]                                       # (NC, TM)
    cls_max_logit = jnp.max(cls_logits, axis=0, keepdims=True)
    cls_score = jax.nn.sigmoid(cls_max_logit)                     # 1 sigmoid
    ids = lax.broadcasted_iota(jnp.int32, cls_logits.shape, 0).astype(jnp.float32)
    cls_idx = jnp.min(jnp.where(cls_logits == cls_max_logit, ids, float(NC)),
                      axis=0, keepdims=True)   # first-occurrence argmax (torch.max)

    # grid coords generated in-kernel from the tile's program id (f32 path is
    # exact while pixel index < 2^24)
    base = (pl.program_id(0) * tm).astype(jnp.float32)
    pix = base + lax.broadcasted_iota(jnp.int32, (1, tm), 1).astype(jnp.float32)
    gy = jnp.floor(pix / float(img_w))
    gx = pix - gy * float(img_w)

    xc = (box[0:1, :] * 2.0 - 0.5 + gx) * STRIDE
    yc = (box[1:2, :] * 2.0 - 0.5 + gy) * STRIDE
    w = (box[2:3, :] * 2.0) ** 2 * ANCHOR_W
    h = (box[3:4, :] * 2.0) ** 2 * ANCHOR_H
    conf = obj * cls_score                                        # obj * cls conf
    valid = jnp.logical_and(obj_logit > _OBJ_LOGIT_THRES,
                            conf > CONF_THRES).astype(jnp.float32)

    # lane-dense packed output, written row by row (no concatenate intermediate)
    out_ref[0:1, :] = xc - 0.5 * w
    out_ref[1:2, :] = yc - 0.5 * h
    out_ref[2:3, :] = xc + 0.5 * w
    out_ref[3:4, :] = yc + 0.5 * h
    out_ref[4:5, :] = conf
    out_ref[5:6, :] = cls_idx
    out_ref[6:7, :] = valid
    out_ref[7:8, :] = jnp.zeros_like(valid)


def fused_yolo(x_cm, params, img_w):
    # x_cm: (C, M) channels-first pixels of one image (M on the lane axis)
    C, M = x_cm.shape
    tm = _pick_tm(M)
    kernel = functools.partial(_fused_yolo_kernel, img_w=img_w, tm=tm)
    return pl.pallas_call(
        kernel,
        out_shape=jax.ShapeDtypeStruct((8, M), jnp.float32),
        grid=(M // tm,),
        in_specs=[pl.BlockSpec((C, tm), lambda i: (0, i)),
                  pl.BlockSpec(params["w1"].shape, lambda i: (0, 0)),
                  pl.BlockSpec((params["w1"].shape[0], 1), lambda i: (0, 0)),
                  pl.BlockSpec(params["w2"].shape, lambda i: (0, 0)),
                  pl.BlockSpec((params["w2"].shape[0], 1), lambda i: (0, 0)),
                  pl.BlockSpec(params["wh"].shape, lambda i: (0, 0)),
                  pl.BlockSpec((params["wh"].shape[0], 1), lambda i: (0, 0))],
        out_specs=pl.BlockSpec((8, tm), lambda i: (0, i)),
        compiler_params=pltpu.CompilerParams(
            dimension_semantics=("parallel",)),
    )(x_cm, params["w1"], params["b1"].reshape(-1, 1),
      params["w2"], params["b2"].reshape(-1, 1),
      params["wh"], params["bh"].reshape(-1, 1))


# ---------- kernel 2: greedy NMS, (8,128)-packed state, on-the-fly rows -----
def _nms_kernel(n_ref, sb_ref, tiles_ref, keep_ref, alive_sc, *, cap, iou_thres):
    sub = cap // 128
    # box coordinate tiles, candidate j <-> (sublane j//128, lane j%128)
    X1 = tiles_ref[0]
    Y1 = tiles_ref[1]
    X2 = tiles_ref[2]
    Y2 = tiles_ref[3]
    valid = tiles_ref[4]
    area = (X2 - X1) * (Y2 - Y1)

    alive_sc[...] = valid                          # alive := passed conf filter
    keep_ref[...] = jnp.zeros_like(keep_ref)
    idx = (lax.broadcasted_iota(jnp.int32, (sub, 128), 0) * 128
           + lax.broadcasted_iota(jnp.int32, (sub, 128), 1))
    n = jnp.minimum(n_ref[0], cap)                 # trip count (valid candidates)

    def body(i, carry):
        # per-candidate scalars from SMEM: scalar-slot loads, off the VALU path
        x1i = sb_ref[0, i]
        y1i = sb_ref[1, i]
        x2i = sb_ref[2, i]
        y2i = sb_ref[3, i]
        area_i = (x2i - x1i) * (y2i - y1i)

        alive = alive_sc[...]
        mask = idx == i
        a_i = jnp.max(jnp.where(mask, alive, 0.0), axis=1, keepdims=True)
        a_i = jnp.max(a_i, axis=0, keepdims=True)                  # (1,1) alive[i]
        keep_ref[...] = jnp.where(mask, a_i, keep_ref[...])

        # suppression row computed on the fly (single-vreg VPU ops); no cap^2
        # matrix, no division:  inter > iou_thres * union  <=>  IoU > iou_thres
        iw = jnp.maximum(jnp.minimum(X2, x2i) - jnp.maximum(X1, x1i), 0.0)
        ih = jnp.maximum(jnp.minimum(Y2, y2i) - jnp.maximum(Y1, y1i), 0.0)
        inter = iw * ih
        union = area_i + area - inter
        sup = (inter > iou_thres * union).astype(jnp.float32)
        # sup includes the i==i pair, so candidate i also leaves "alive"; its
        # keep flag was already recorded above (ordering matters).
        alive_sc[...] = alive * (1.0 - sup * a_i)
        return carry

    lax.fori_loop(0, n, body, 0)


def nms_greedy(n_valid, sbox, tiles, iou_thres):
    nch, sub, _ = tiles.shape
    cap = sub * 128
    kernel = functools.partial(_nms_kernel, cap=cap, iou_thres=iou_thres)
    return pl.pallas_call(
        kernel,
        out_shape=jax.ShapeDtypeStruct((sub, 128), jnp.float32),
        grid=(1,),
        in_specs=[pl.BlockSpec(memory_space=pltpu.MemorySpace.SMEM),   # n_valid
                  pl.BlockSpec(memory_space=pltpu.MemorySpace.SMEM),   # box scalars
                  pl.BlockSpec((nch, sub, 128), lambda i: (0, 0, 0))],
        out_specs=pl.BlockSpec((sub, 128), lambda i: (0, 0)),
        scratch_shapes=[pltpu.VMEM((sub, 128), jnp.float32)],
        compiler_params=pltpu.CompilerParams(
            dimension_semantics=("arbitrary",)),
    )(n_valid, sbox, tiles)


# ---------------- synthetic YOLO parameters (deterministic) -----------------
def init_params(key):
    k = jax.random.split(key, 3)
    return {
        "w1": 0.3 * jax.random.normal(k[0], (8, 3), jnp.float32),
        "b1": jnp.zeros((8,), jnp.float32),
        "w2": 0.3 * jax.random.normal(k[1], (16, 8), jnp.float32),
        "b2": jnp.zeros((16,), jnp.float32),
        "wh": 0.3 * jax.random.normal(k[2], (9, 16), jnp.float32),
        # bias the objectness / class logits so some candidates pass 0.4
        "bh": jnp.concatenate([jnp.zeros((4,), jnp.float32),
                               jnp.array([2.0], jnp.float32),
                               jnp.full((NC,), 1.0, jnp.float32)]),
    }


# ---------------- full forward: model(img) -> NMS -> detections[0] ----------
@jax.jit
def yolo_forward(params, img):
    B, C, H, W = img.shape
    # non_max_suppression(pred)[0] -> only image 0 contributes to the returned
    # value, so the fused backbone/head kernel runs on image 0 only.
    x0 = img[0].reshape(C, H * W)                   # channels-first, lane-major
    feat = fused_yolo(x0, params, W)                # (8, H*W) packed
    N = H * W

    conf = feat[4]
    valid = feat[6]
    score = jnp.where(valid > 0.5, conf, -jnp.inf)

    # cap candidates BEFORE the O(cap) greedy stage (yolov5-style max_nms cap);
    # for large images use TPU-native approx_max_k instead of an exact sort.
    # TODO(synk): a fused per-tile partial top-k in kernel 1 would also remove
    # the (8, H*W) feat HBM round-trip for very large images.
    k = min(N, NMS_CAP)
    if N > NMS_CAP:
        _, pre = lax.approx_max_k(score, NMS_CAP, recall_target=0.95)
        order = lax.top_k(score[pre], NMS_CAP)[1]   # exact sort of the survivors
        top_idx = pre[order]
    else:
        top_idx = lax.top_k(score, k)[1]            # descending by score
    cand = feat[:, top_idx]                         # (8, k)
    if k < NMS_CAP:
        cand = jnp.pad(cand, ((0, 0), (0, NMS_CAP - k)))   # padded rows: valid=0
    cap = NMS_CAP

    vx1, vy1, vx2, vy2 = cand[0], cand[1], cand[2], cand[3]
    vconf, vcls, vvalid = cand[4], cand[5], cand[6]
    off = vcls * MAX_WH                             # class-aware box offset
    bx1, by1, bx2, by2 = vx1 + off, vy1 + off, vx2 + off, vy2 + off

    sub = cap // 128
    tiles = jnp.stack([bx1, by1, bx2, by2, vvalid], 0).reshape(5, sub, 128)
    sbox = jnp.stack([bx1, by1, bx2, by2], 0)       # (4, cap) SMEM scalar table
    n_valid = jnp.minimum(jnp.sum(valid > 0.5), cap).astype(jnp.int32).reshape(1)

    keep = nms_greedy(n_valid, sbox, tiles, IOU_THRES).reshape(cap) > 0.5

    det = jnp.stack([vx1, vy1, vx2, vy2, vconf, vcls], axis=1)   # (cap, 6)
    # compact kept detections to the front (stable sort -> stays score-sorted)
    comp = jnp.argsort(jnp.where(keep, 0, 1), stable=True)
    n_det = jnp.minimum(jnp.sum(keep), MAX_DET).astype(jnp.int32)
    out = det[comp]
    row_ok = (jnp.arange(cap) < n_det)[:, None]
    # TODO(synk): torchvision NMS returns a variable-length (n, 6) tensor;
    # here it is padded to (cap, 6) with an explicit valid-detection count.
    out = jnp.where(row_ok, out, 0.0)
    return out, n_det


if __name__ == "__main__":
    key = jax.random.PRNGKey(0)
    pkey, ikey = jax.random.split(key)
    params = init_params(pkey)
    img = jax.random.uniform(ikey, (2, 3, 32, 32), dtype=jnp.float32)
    detections, n_det = yolo_forward(params, img)
    jax.block_until_ready((detections, n_det))
    print("KERNEL_OK")
</pallas_src>

<mosaic_0001>
module attributes {stable_mosaic.version = 11 : i64} {
  func.func @_fused_yolo_kernel(%arg0: i32, %arg1: memref<3x1024xf32, #tpu.memory_space<vmem>>, %arg2: memref<8x3xf32, #tpu.memory_space<vmem>>, %arg3: memref<8x1xf32, #tpu.memory_space<vmem>>, %arg4: memref<16x8xf32, #tpu.memory_space<vmem>>, %arg5: memref<16x1xf32, #tpu.memory_space<vmem>>, %arg6: memref<9x16xf32, #tpu.memory_space<vmem>>, %arg7: memref<9x1xf32, #tpu.memory_space<vmem>>, %arg8: memref<8x1024xf32, #tpu.memory_space<vmem>>) attributes {dimension_semantics = [#tpu.dimension_semantics<parallel>], iteration_bounds = array<i64: 1>, scalar_prefetch = 0 : i64, scratch_operands = 0 : i64, tpu.core_type = #tpu.core_type<tc>, window_params = [{transform_indices = @transform_0, window_bounds = array<i64: 3, 1024>}, {pipeline_mode = #tpu.pipeline_mode<synchronous>, transform_indices = @transform_1, window_bounds = array<i64: 8, 3>}, {pipeline_mode = #tpu.pipeline_mode<synchronous>, transform_indices = @transform_2, window_bounds = array<i64: 8, 1>}, {pipeline_mode = #tpu.pipeline_mode<synchronous>, transform_indices = @transform_3, window_bounds = array<i64: 16, 8>}, {pipeline_mode = #tpu.pipeline_mode<synchronous>, transform_indices = @transform_4, window_bounds = array<i64: 16, 1>}, {pipeline_mode = #tpu.pipeline_mode<synchronous>, transform_indices = @transform_5, window_bounds = array<i64: 9, 16>}, {pipeline_mode = #tpu.pipeline_mode<synchronous>, transform_indices = @transform_6, window_bounds = array<i64: 9, 1>}, {transform_indices = @transform_7, window_bounds = array<i64: 8, 1024>}]} {
    %c0 = arith.constant 0 : index
    %c0_0 = arith.constant 0 : index
    %0 = vector.load %arg2[%c0, %c0_0] : memref<8x3xf32, #tpu.memory_space<vmem>>, vector<8x3xf32>
    %c0_1 = arith.constant 0 : index
    %c0_2 = arith.constant 0 : index
    %1 = vector.load %arg1[%c0_1, %c0_2] : memref<3x1024xf32, #tpu.memory_space<vmem>>, vector<3x1024xf32>
    %cst = arith.constant dense<0.000000e+00> : vector<8x1024xf32>
    %2 = tpu.matmul %0, %1, %cst {dimension_numbers = #tpu.dot_dimension_numbers<[1], [0], [0], [1], [0, 0, 1, 1], [], []>} : vector<8x3xf32>, vector<3x1024xf32>, vector<8x1024xf32> -> vector<8x1024xf32>
    %c0_3 = arith.constant 0 : index
    %c0_4 = arith.constant 0 : index
    %3 = vector.load %arg3[%c0_3, %c0_4] : memref<8x1xf32, #tpu.memory_space<vmem>>, vector<8x1xf32>
    %4 = vector.broadcast %3 : vector<8x1xf32> to vector<8x1024xf32>
    %5 = arith.addf %2, %4 : vector<8x1024xf32>
    %6 = arith.negf %5 : vector<8x1024xf32>
    %7 = math.exp %6 : vector<8x1024xf32>
    %cst_5 = arith.constant 1.000000e+00 : f32
    %8 = vector.broadcast %cst_5 : f32 to vector<8x1024xf32>
    %9 = arith.addf %8, %7 : vector<8x1024xf32>
    %10 = arith.divf %8, %9 : vector<8x1024xf32>
    %11 = arith.mulf %5, %10 : vector<8x1024xf32>
    %c0_6 = arith.constant 0 : index
    %c0_7 = arith.constant 0 : index
    %12 = vector.load %arg4[%c0_6, %c0_7] : memref<16x8xf32, #tpu.memory_space<vmem>>, vector<16x8xf32>
    %cst_8 = arith.constant dense<0.000000e+00> : vector<16x1024xf32>
    %13 = tpu.matmul %12, %11, %cst_8 {dimension_numbers = #tpu.dot_dimension_numbers<[1], [0], [0], [1], [0, 0, 1, 1], [], []>} : vector<16x8xf32>, vector<8x1024xf32>, vector<16x1024xf32> -> vector<16x1024xf32>
    %c0_9 = arith.constant 0 : index
    %c0_10 = arith.constant 0 : index
    %14 = vector.load %arg5[%c0_9, %c0_10] : memref<16x1xf32, #tpu.memory_space<vmem>>, vector<16x1xf32>
    %15 = vector.broadcast %14 : vector<16x1xf32> to vector<16x1024xf32>
    %16 = arith.addf %13, %15 : vector<16x1024xf32>
    %17 = arith.negf %16 : vector<16x1024xf32>
    %18 = math.exp %17 : vector<16x1024xf32>
    %cst_11 = arith.constant 1.000000e+00 : f32
    %19 = vector.broadcast %cst_11 : f32 to vector<16x1024xf32>
    %20 = arith.addf %19, %18 : vector<16x1024xf32>
    %21 = arith.divf %19, %20 : vector<16x1024xf32>
    %22 = arith.mulf %16, %21 : vector<16x1024xf32>
    %c0_12 = arith.constant 0 : index
    %c0_13 = arith.constant 0 : index
    %23 = vector.load %arg6[%c0_12, %c0_13] : memref<9x16xf32, #tpu.memory_space<vmem>>, vector<9x16xf32>
    %cst_14 = arith.constant dense<0.000000e+00> : vector<9x1024xf32>
    %24 = tpu.matmul %23, %22, %cst_14 {dimension_numbers = #tpu.dot_dimension_numbers<[1], [0], [0], [1], [0, 0, 1, 1], [], []>} : vector<9x16xf32>, vector<16x1024xf32>, vector<9x1024xf32> -> vector<9x1024xf32>
    %c0_15 = arith.constant 0 : index
    %c0_16 = arith.constant 0 : index
    %25 = vector.load %arg7[%c0_15, %c0_16] : memref<9x1xf32, #tpu.memory_space<vmem>>, vector<9x1xf32>
    %26 = vector.broadcast %25 : vector<9x1xf32> to vector<9x1024xf32>
    %27 = arith.addf %24, %26 : vector<9x1024xf32>
    %28 = vector.extract_strided_slice %27 {offsets = [0, 0], sizes = [4, 1024], strides = [1, 1]} : vector<9x1024xf32> to vector<4x1024xf32>
    %29 = arith.negf %28 : vector<4x1024xf32>
    %30 = math.exp %29 : vector<4x1024xf32>
    %cst_17 = arith.constant 1.000000e+00 : f32
    %31 = vector.broadcast %cst_17 : f32 to vector<4x1024xf32>
    %32 = arith.addf %31, %30 : vector<4x1024xf32>
    %33 = arith.divf %31, %32 : vector<4x1024xf32>
    %34 = vector.extract_strided_slice %27 {offsets = [4, 0], sizes = [1, 1024], strides = [1, 1]} : vector<9x1024xf32> to vector<1x1024xf32>
    %35 = arith.negf %34 : vector<1x1024xf32>
    %36 = math.exp %35 : vector<1x1024xf32>
    %cst_18 = arith.constant 1.000000e+00 : f32
    %37 = vector.broadcast %cst_18 : f32 to vector<1x1024xf32>
    %38 = arith.addf %37, %36 : vector<1x1024xf32>
    %39 = arith.divf %37, %38 : vector<1x1024xf32>
    %40 = vector.extract_strided_slice %27 {offsets = [5, 0], sizes = [4, 1024], strides = [1, 1]} : vector<9x1024xf32> to vector<4x1024xf32>
    %cst_19 = arith.constant dense<0xFF800000> : vector<1024xf32>
    %41 = vector.multi_reduction <maximumf>, %40, %cst_19 [0] : vector<4x1024xf32> to vector<1024xf32>
    %42 = vector.shape_cast %41 : vector<1024xf32> to vector<1x1024xf32>
    %43 = arith.negf %42 : vector<1x1024xf32>
    %44 = math.exp %43 : vector<1x1024xf32>
    %cst_20 = arith.constant 1.000000e+00 : f32
    %45 = vector.broadcast %cst_20 : f32 to vector<1x1024xf32>
    %46 = arith.addf %45, %44 : vector<1x1024xf32>
    %47 = arith.divf %45, %46 : vector<1x1024xf32>
    %48 = tpu.iota {dimensions = array<i32: 0>} : vector<4x1024xi32>
    %49 = arith.sitofp %48 : vector<4x1024xi32> to vector<4x1024xf32>
    %50 = vector.broadcast %42 : vector<1x1024xf32> to vector<4x1024xf32>
    %51 = arith.cmpf oeq, %40, %50 : vector<4x1024xf32>
    %cst_21 = arith.constant 4.000000e+00 : f32
    %52 = vector.broadcast %cst_21 : f32 to vector<4x1024xf32>
    %53 = arith.select %51, %49, %52 : vector<4x1024xi1>, vector<4x1024xf32>
    %cst_22 = arith.constant dense<0x7F800000> : vector<1024xf32>
    %54 = vector.multi_reduction <minimumf>, %53, %cst_22 [0] : vector<4x1024xf32> to vector<1024xf32>
    %55 = vector.shape_cast %54 : vector<1024xf32> to vector<1x1024xf32>
    %c1024_i32 = arith.constant 1024 : i32
    %56 = arith.muli %arg0, %c1024_i32 : i32
    %57 = arith.sitofp %56 : i32 to f32
    %58 = tpu.iota {dimensions = array<i32: 1>} : vector<1x1024xi32>
    %59 = arith.sitofp %58 : vector<1x1024xi32> to vector<1x1024xf32>
    %60 = vector.broadcast %57 : f32 to vector<1x1024xf32>
    %61 = arith.addf %60, %59 : vector<1x1024xf32>
    %cst_23 = arith.constant 3.200000e+01 : f32
    %62 = vector.broadcast %cst_23 : f32 to vector<1x1024xf32>
    %63 = arith.divf %61, %62 : vector<1x1024xf32>
    %64 = math.floor %63 : vector<1x1024xf32>
    %cst_24 = arith.constant 3.200000e+01 : f32
    %65 = vector.broadcast %cst_24 : f32 to vector<1x1024xf32>
    %66 = arith.mulf %64, %65 : vector<1x1024xf32>
    %67 = arith.subf %61, %66 : vector<1x1024xf32>
    %68 = vector.extract_strided_slice %33 {offsets = [0, 0], sizes = [1, 1024], strides = [1, 1]} : vector<4x1024xf32> to vector<1x1024xf32>
    %cst_25 = arith.constant 2.000000e+00 : f32
    %69 = vector.broadcast %cst_25 : f32 to vector<1x1024xf32>
    %70 = arith.mulf %68, %69 : vector<1x1024xf32>
    %cst_26 = arith.constant 5.000000e-01 : f32
    %71 = vector.broadcast %cst_26 : f32 to vector<1x1024xf32>
    %72 = arith.subf %70, %71 : vector<1x1024xf32>
    %73 = arith.addf %72, %67 : vector<1x1024xf32>
    %cst_27 = arith.constant 1.000000e+00 : f32
    %74 = vector.broadcast %cst_27 : f32 to vector<1x1024xf32>
    %75 = arith.mulf %73, %74 : vector<1x1024xf32>
    %76 = vector.extract_strided_slice %33 {offsets = [1, 0], sizes = [1, 1024], strides = [1, 1]} : vector<4x1024xf32> to vector<1x1024xf32>
    %cst_28 = arith.constant 2.000000e+00 : f32
    %77 = vector.broadcast %cst_28 : f32 to vector<1x1024xf32>
    %78 = arith.mulf %76, %77 : vector<1x1024xf32>
    %cst_29 = arith.constant 5.000000e-01 : f32
    %79 = vector.broadcast %cst_29 : f32 to vector<1x1024xf32>
    %80 = arith.subf %78, %79 : vector<1x1024xf32>
    %81 = arith.addf %80, %64 : vector<1x1024xf32>
    %cst_30 = arith.constant 1.000000e+00 : f32
    %82 = vector.broadcast %cst_30 : f32 to vector<1x1024xf32>
    %83 = arith.mulf %81, %82 : vector<1x1024xf32>
    %84 = vector.extract_strided_slice %33 {offsets = [2, 0], sizes = [1, 1024], strides = [1, 1]} : vector<4x1024xf32> to vector<1x1024xf32>
    %cst_31 = arith.constant 2.000000e+00 : f32
    %85 = vector.broadcast %cst_31 : f32 to vector<1x1024xf32>
    %86 = arith.mulf %84, %85 : vector<1x1024xf32>
    %87 = arith.mulf %86, %86 : vector<1x1024xf32>
    %cst_32 = arith.constant 4.000000e+00 : f32
    %88 = vector.broadcast %cst_32 : f32 to vector<1x1024xf32>
    %89 = arith.mulf %87, %88 : vector<1x1024xf32>
    %90 = vector.extract_strided_slice %33 {offsets = [3, 0], sizes = [1, 1024], strides = [1, 1]} : vector<4x1024xf32> to vector<1x1024xf32>
    %cst_33 = arith.constant 2.000000e+00 : f32
    %91 = vector.broadcast %cst_33 : f32 to vector<1x1024xf32>
    %92 = arith.mulf %90, %91 : vector<1x1024xf32>
    %93 = arith.mulf %92, %92 : vector<1x1024xf32>
    %cst_34 = arith.constant 4.000000e+00 : f32
    %94 = vector.broadcast %cst_34 : f32 to vector<1x1024xf32>
    %95 = arith.mulf %93, %94 : vector<1x1024xf32>
    %96 = arith.mulf %39, %47 : vector<1x1024xf32>
    %cst_35 = arith.constant -0.405465096 : f32
    %97 = vector.broadcast %cst_35 : f32 to vector<1x1024xf32>
    %98 = arith.cmpf ogt, %34, %97 : vector<1x1024xf32>
    %cst_36 = arith.constant 4.000000e-01 : f32
    %99 = vector.broadcast %cst_36 : f32 to vector<1x1024xf32>
    %100 = arith.cmpf ogt, %96, %99 : vector<1x1024xf32>
    %101 = arith.andi %98, %100 : vector<1x1024xi1>
    %102 = arith.extui %101 : vector<1x1024xi1> to vector<1x1024xi32>
    %103 = arith.sitofp %102 : vector<1x1024xi32> to vector<1x1024xf32>
    %cst_37 = arith.constant 5.000000e-01 : f32
    %104 = vector.broadcast %cst_37 : f32 to vector<1x1024xf32>
    %105 = arith.mulf %104, %89 : vector<1x1024xf32>
    %106 = arith.subf %75, %105 : vector<1x1024xf32>
    %c0_38 = arith.constant 0 : index
    %c0_39 = arith.constant 0 : index
    %107 = vector.load %arg8[%c0_38, %c0_39] : memref<8x1024xf32, #tpu.memory_space<vmem>>, vector<1x1024xf32>
    tpu.vector_store %arg8[%c0_38, %c0_39], %106 {strides = array<i32>} : memref<8x1024xf32, #tpu.memory_space<vmem>>, vector<1x1024xf32>,
    %cst_40 = arith.constant 5.000000e-01 : f32
    %108 = vector.broadcast %cst_40 : f32 to vector<1x1024xf32>
    %109 = arith.mulf %108, %95 : vector<1x1024xf32>
    %110 = arith.subf %83, %109 : vector<1x1024xf32>
    %c1 = arith.constant 1 : index
    %c0_41 = arith.constant 0 : index
    %111 = vector.load %arg8[%c1, %c0_41] : memref<8x1024xf32, #tpu.memory_space<vmem>>, vector<1x1024xf32>
    tpu.vector_store %arg8[%c1, %c0_41], %110 {strides = array<i32>} : memref<8x1024xf32, #tpu.memory_space<vmem>>, vector<1x1024xf32>,
    %cst_42 = arith.constant 5.000000e-01 : f32
    %112 = vector.broadcast %cst_42 : f32 to vector<1x1024xf32>
    %113 = arith.mulf %112, %89 : vector<1x1024xf32>
    %114 = arith.addf %75, %113 : vector<1x1024xf32>
    %c2 = arith.constant 2 : index
    %c0_43 = arith.constant 0 : index
    %115 = vector.load %arg8[%c2, %c0_43] : memref<8x1024xf32, #tpu.memory_space<vmem>>, vector<1x1024xf32>
    tpu.vector_store %arg8[%c2, %c0_43], %114 {strides = array<i32>} : memref<8x1024xf32, #tpu.memory_space<vmem>>, vector<1x1024xf32>,
    %cst_44 = arith.constant 5.000000e-01 : f32
    %116 = vector.broadcast %cst_44 : f32 to vector<1x1024xf32>
    %117 = arith.mulf %116, %95 : vector<1x1024xf32>
    %118 = arith.addf %83, %117 : vector<1x1024xf32>
    %c3 = arith.constant 3 : index
    %c0_45 = arith.constant 0 : index
    %119 = vector.load %arg8[%c3, %c0_45] : memref<8x1024xf32, #tpu.memory_space<vmem>>, vector<1x1024xf32>
    tpu.vector_store %arg8[%c3, %c0_45], %118 {strides = array<i32>} : memref<8x1024xf32, #tpu.memory_space<vmem>>, vector<1x1024xf32>,
    %c4 = arith.constant 4 : index
    %c0_46 = arith.constant 0 : index
    %120 = vector.load %arg8[%c4, %c0_46] : memref<8x1024xf32, #tpu.memory_space<vmem>>, vector<1x1024xf32>
    tpu.vector_store %arg8[%c4, %c0_46], %96 {strides = array<i32>} : memref<8x1024xf32, #tpu.memory_space<vmem>>, vector<1x1024xf32>,
    %c5 = arith.constant 5 : index
    %c0_47 = arith.constant 0 : index
    %121 = vector.load %arg8[%c5, %c0_47] : memref<8x1024xf32, #tpu.memory_space<vmem>>, vector<1x1024xf32>
    tpu.vector_store %arg8[%c5, %c0_47], %55 {strides = array<i32>} : memref<8x1024xf32, #tpu.memory_space<vmem>>, vector<1x1024xf32>,
    %c6 = arith.constant 6 : index
    %c0_48 = arith.constant 0 : index
    %122 = vector.load %arg8[%c6, %c0_48] : memref<8x1024xf32, #tpu.memory_space<vmem>>, vector<1x1024xf32>
    tpu.vector_store %arg8[%c6, %c0_48], %103 {strides = array<i32>} : memref<8x1024xf32, #tpu.memory_space<vmem>>, vector<1x1024xf32>,
    %cst_49 = arith.constant 0.000000e+00 : f32
    %123 = vector.broadcast %cst_49 : f32 to vector<1x1024xf32>
    %c7 = arith.constant 7 : index
    %c0_50 = arith.constant 0 : index
    %124 = vector.load %arg8[%c7, %c0_50] : memref<8x1024xf32, #tpu.memory_space<vmem>>, vector<1x1024xf32>
    tpu.vector_store %arg8[%c7, %c0_50], %123 {strides = array<i32>} : memref<8x1024xf32, #tpu.memory_space<vmem>>, vector<1x1024xf32>,
    return
  }
  func.func @transform_0(%arg0: i32) -> (i32, i32) {
    %c0_i32 = arith.constant 0 : i32
    %c0_i32_0 = arith.constant 0 : i32
    return %c0_i32, %arg0 : i32, i32
  }
  func.func @transform_1(%arg0: i32) -> (i32, i32) {
    %c0_i32 = arith.constant 0 : i32
    %c0_i32_0 = arith.constant 0 : i32
    %c0_i32_1 = arith.constant 0 : i32
    return %c0_i32, %c0_i32_0 : i32, i32
  }
  func.func @transform_2(%arg0: i32) -> (i32, i32) {
    %c0_i32 = arith.constant 0 : i32
    %c0_i32_0 = arith.constant 0 : i32
    %c0_i32_1 = arith.constant 0 : i32
    return %c0_i32, %c0_i32_0 : i32, i32
  }
  func.func @transform_3(%arg0: i32) -> (i32, i32) {
    %c0_i32 = arith.constant 0 : i32
    %c0_i32_0 = arith.constant 0 : i32
    %c0_i32_1 = arith.constant 0 : i32
    return %c0_i32, %c0_i32_0 : i32, i32
  }
  func.func @transform_4(%arg0: i32) -> (i32, i32) {
    %c0_i32 = arith.constant 0 : i32
    %c0_i32_0 = arith.constant 0 : i32
    %c0_i32_1 = arith.constant 0 : i32
    return %c0_i32, %c0_i32_0 : i32, i32
  }
  func.func @transform_5(%arg0: i32) -> (i32, i32) {
    %c0_i32 = arith.constant 0 : i32
    %c0_i32_0 = arith.constant 0 : i32
    %c0_i32_1 = arith.constant 0 : i32
    return %c0_i32, %c0_i32_0 : i32, i32
  }
  func.func @transform_6(%arg0: i32) -> (i32, i32) {
    %c0_i32 = arith.constant 0 : i32
    %c0_i32_0 = arith.constant 0 : i32
    %c0_i32_1 = arith.constant 0 : i32
    return %c0_i32, %c0_i32_0 : i32, i32
  }
  func.func @transform_7(%arg0: i32) -> (i32, i32) {
    %c0_i32 = arith.constant 0 : i32
    %c0_i32_0 = arith.constant 0 : i32
    return %c0_i32, %arg0 : i32, i32
  }
}

module attributes {stable_mosaic.version = 11 : i64} {
  func.func @_nms_kernel(%arg0: i32, %arg1: memref<1xi32, #tpu.memory_space<smem>>, %arg2: memref<4x1024xf32, #tpu.memory_space<smem>>, %arg3: memref<5x8x128xf32, #tpu.memory_space<vmem>>, %arg4: memref<8x128xf32, #tpu.memory_space<vmem>>, %arg5: memref<8x128xf32, #tpu.memory_space<vmem>>) attributes {dimension_semantics = [#tpu.dimension_semantics<arbitrary>], iteration_bounds = array<i64: 1>, scalar_prefetch = 0 : i64, scratch_operands = 1 : i64, tpu.core_type = #tpu.core_type<tc>, window_params = [{transform_indices = @transform_0, window_bounds = array<i64: 1>}, {transform_indices = @transform_1, window_bounds = array<i64: 4, 1024>}, {pipeline_mode = #tpu.pipeline_mode<synchronous>, transform_indices = @transform_2, window_bounds = array<i64: 5, 8, 128>}, {pipeline_mode = #tpu.pipeline_mode<synchronous>, transform_indices = @transform_3, window_bounds = array<i64: 8, 128>}]} {
    %c0 = arith.constant 0 : index
    %c0_0 = arith.constant 0 : index
    %c0_1 = arith.constant 0 : index
    %0 = vector.load %arg3[%c0, %c0_0, %c0_1] : memref<5x8x128xf32, #tpu.memory_space<vmem>>, vector<1x8x128xf32>
    %1 = vector.shape_cast %0 : vector<1x8x128xf32> to vector<8x128xf32>
    %c1 = arith.constant 1 : index
    %c0_2 = arith.constant 0 : index
    %c0_3 = arith.constant 0 : index
    %2 = vector.load %arg3[%c1, %c0_2, %c0_3] : memref<5x8x128xf32, #tpu.memory_space<vmem>>, vector<1x8x128xf32>
    %3 = vector.shape_cast %2 : vector<1x8x128xf32> to vector<8x128xf32>
    %c2 = arith.constant 2 : index
    %c0_4 = arith.constant 0 : index
    %c0_5 = arith.constant 0 : index
    %4 = vector.load %arg3[%c2, %c0_4, %c0_5] : memref<5x8x128xf32, #tpu.memory_space<vmem>>, vector<1x8x128xf32>
    %5 = vector.shape_cast %4 : vector<1x8x128xf32> to vector<8x128xf32>
    %c3 = arith.constant 3 : index
    %c0_6 = arith.constant 0 : index
    %c0_7 = arith.constant 0 : index
    %6 = vector.load %arg3[%c3, %c0_6, %c0_7] : memref<5x8x128xf32, #tpu.memory_space<vmem>>, vector<1x8x128xf32>
    %7 = vector.shape_cast %6 : vector<1x8x128xf32> to vector<8x128xf32>
    %c4 = arith.constant 4 : index
    %c0_8 = arith.constant 0 : index
    %c0_9 = arith.constant 0 : index
    %8 = vector.load %arg3[%c4, %c0_8, %c0_9] : memref<5x8x128xf32, #tpu.memory_space<vmem>>, vector<1x8x128xf32>
    %9 = vector.shape_cast %8 : vector<1x8x128xf32> to vector<8x128xf32>
    %10 = arith.subf %5, %1 : vector<8x128xf32>
    %11 = arith.subf %7, %3 : vector<8x128xf32>
    %12 = arith.mulf %10, %11 : vector<8x128xf32>
    %c0_10 = arith.constant 0 : index
    %c0_11 = arith.constant 0 : index
    %13 = vector.load %arg5[%c0_10, %c0_11] : memref<8x128xf32, #tpu.memory_space<vmem>>, vector<8x128xf32>
    tpu.vector_store %arg5[%c0_10, %c0_11], %9 {strides = array<i32>} : memref<8x128xf32, #tpu.memory_space<vmem>>, vector<8x128xf32>,
    %cst = arith.constant 0.000000e+00 : f32
    %14 = vector.broadcast %cst : f32 to vector<8x128xf32>
    %c0_12 = arith.constant 0 : index
    %c0_13 = arith.constant 0 : index
    %15 = vector.load %arg4[%c0_12, %c0_13] : memref<8x128xf32, #tpu.memory_space<vmem>>, vector<8x128xf32>
    tpu.vector_store %arg4[%c0_12, %c0_13], %14 {strides = array<i32>} : memref<8x128xf32, #tpu.memory_space<vmem>>, vector<8x128xf32>,
    %16 = tpu.iota {dimensions = array<i32: 0>} : vector<8x128xi32>
    %c128_i32 = arith.constant 128 : i32
    %17 = vector.broadcast %c128_i32 : i32 to vector<8x128xi32>
    %18 = arith.muli %16, %17 : vector<8x128xi32>
    %19 = tpu.iota {dimensions = array<i32: 1>} : vector<8x128xi32>
    %20 = arith.addi %18, %19 : vector<8x128xi32>
    %c0_14 = arith.constant 0 : index
    %21 = memref.load %arg1[%c0_14] : memref<1xi32, #tpu.memory_space<smem>>
    %c1024_i32 = arith.constant 1024 : i32
    %22 = arith.minsi %21, %c1024_i32 : i32
    %c0_i32 = arith.constant 0 : i32
    %c0_i32_15 = arith.constant 0 : i32
    %23 = arith.subi %22, %c0_i32_15 : i32
    %24 = arith.addi %c0_i32_15, %23 : i32
    %c1_i32 = arith.constant 1 : i32
    scf.for %arg6 = %c0_i32_15 to %24 step %c1_i32  : i32 {
      %c0_16 = arith.constant 0 : index
      %25 = arith.index_cast %arg6 : i32 to index
      %26 = memref.load %arg2[%c0_16, %25] : memref<4x1024xf32, #tpu.memory_space<smem>>
      %c1_17 = arith.constant 1 : index
      %27 = arith.index_cast %arg6 : i32 to index
      %28 = memref.load %arg2[%c1_17, %27] : memref<4x1024xf32, #tpu.memory_space<smem>>
      %c2_18 = arith.constant 2 : index
      %29 = arith.index_cast %arg6 : i32 to index
      %30 = memref.load %arg2[%c2_18, %29] : memref<4x1024xf32, #tpu.memory_space<smem>>
      %c3_19 = arith.constant 3 : index
      %31 = arith.index_cast %arg6 : i32 to index
      %32 = memref.load %arg2[%c3_19, %31] : memref<4x1024xf32, #tpu.memory_space<smem>>
      %33 = arith.subf %30, %26 : f32
      %34 = arith.subf %32, %28 : f32
      %35 = arith.mulf %33, %34 : f32
      %c0_20 = arith.constant 0 : index
      %c0_21 = arith.constant 0 : index
      %36 = vector.load %arg5[%c0_20, %c0_21] : memref<8x128xf32, #tpu.memory_space<vmem>>, vector<8x128xf32>
      %37 = vector.broadcast %arg6 : i32 to vector<8x128xi32>
      %38 = arith.cmpi eq, %20, %37 : vector<8x128xi32>
      %cst_22 = arith.constant 0.000000e+00 : f32
      %39 = vector.broadcast %cst_22 : f32 to vector<8x128xf32>
      %40 = arith.select %38, %36, %39 : vector<8x128xi1>, vector<8x128xf32>
      %cst_23 = arith.constant dense<0xFF800000> : vector<8xf32>
      %41 = vector.multi_reduction <maximumf>, %40, %cst_23 [1] : vector<8x128xf32> to vector<8xf32>
      %42 = vector.shape_cast %41 : vector<8xf32> to vector<8x1xf32>
      %cst_24 = arith.constant dense<0xFF800000> : vector<1xf32>
      %43 = vector.multi_reduction <maximumf>, %42, %cst_24 [0] : vector<8x1xf32> to vector<1xf32>
      %44 = vector.shape_cast %43 : vector<1xf32> to vector<1x1xf32>
      %c0_25 = arith.constant 0 : index
      %c0_26 = arith.constant 0 : index
      %45 = vector.load %arg4[%c0_25, %c0_26] : memref<8x128xf32, #tpu.memory_space<vmem>>, vector<8x128xf32>
      %46 = vector.shape_cast %44 : vector<1x1xf32> to vector<1x1xf32>
      %47 = vector.broadcast %46 : vector<1x1xf32> to vector<8x128xf32>
      %48 = arith.select %38, %47, %45 : vector<8x128xi1>, vector<8x128xf32>
      %c0_27 = arith.constant 0 : index
      %c0_28 = arith.constant 0 : index
      %49 = vector.load %arg4[%c0_27, %c0_28] : memref<8x128xf32, #tpu.memory_space<vmem>>, vector<8x128xf32>
      tpu.vector_store %arg4[%c0_27, %c0_28], %48 {strides = array<i32>} : memref<8x128xf32, #tpu.memory_space<vmem>>, vector<8x128xf32>,
      %50 = vector.broadcast %30 : f32 to vector<8x128xf32>
      %51 = arith.minimumf %5, %50 : vector<8x128xf32>
      %52 = vector.broadcast %26 : f32 to vector<8x128xf32>
      %53 = arith.maximumf %1, %52 : vector<8x128xf32>
      %54 = arith.subf %51, %53 : vector<8x128xf32>
      %cst_29 = arith.constant 0.000000e+00 : f32
      %55 = vector.broadcast %cst_29 : f32 to vector<8x128xf32>
      %56 = arith.maximumf %54, %55 : vector<8x128xf32>
      %57 = vector.broadcast %32 : f32 to vector<8x128xf32>
      %58 = arith.minimumf %7, %57 : vector<8x128xf32>
      %59 = vector.broadcast %28 : f32 to vector<8x128xf32>
      %60 = arith.maximumf %3, %59 : vector<8x128xf32>
      %61 = arith.subf %58, %60 : vector<8x128xf32>
      %cst_30 = arith.constant 0.000000e+00 : f32
      %62 = vector.broadcast %cst_30 : f32 to vector<8x128xf32>
      %63 = arith.maximumf %61, %62 : vector<8x128xf32>
      %64 = arith.mulf %56, %63 : vector<8x128xf32>
      %65 = vector.broadcast %35 : f32 to vector<8x128xf32>
      %66 = arith.addf %65, %12 : vector<8x128xf32>
      %67 = arith.subf %66, %64 : vector<8x128xf32>
      %cst_31 = arith.constant 4.500000e-01 : f32
      %68 = vector.broadcast %cst_31 : f32 to vector<8x128xf32>
      %69 = arith.mulf %68, %67 : vector<8x128xf32>
      %70 = arith.cmpf ogt, %64, %69 : vector<8x128xf32>
      %71 = arith.extui %70 : vector<8x128xi1> to vector<8x128xi32>
      %72 = arith.sitofp %71 : vector<8x128xi32> to vector<8x128xf32>
      %73 = vector.broadcast %44 : vector<1x1xf32> to vector<8x128xf32>
      %74 = arith.mulf %72, %73 : vector<8x128xf32>
      %cst_32 = arith.constant 1.000000e+00 : f32
      %75 = vector.broadcast %cst_32 : f32 to vector<8x128xf32>
      %76 = arith.subf %75, %74 : vector<8x128xf32>
      %77 = arith.mulf %36, %76 : vector<8x128xf32>
      %c0_33 = arith.constant 0 : index
      %c0_34 = arith.constant 0 : index
      %78 = vector.load %arg5[%c0_33, %c0_34] : memref<8x128xf32, #tpu.memory_space<vmem>>, vector<8x128xf32>
      tpu.vector_store %arg5[%c0_33, %c0_34], %77 {strides = array<i32>} : memref<8x128xf32, #tpu.memory_space<vmem>>, vector<8x128xf32>,
    }
    return
  }
  func.func @transform_0(%arg0: i32) -> i32 {
    %c0_i32 = arith.constant 0 : i32
    %c0_i32_0 = arith.constant 0 : i32
    return %c0_i32 : i32
  }
  func.func @transform_1(%arg0: i32) -> (i32, i32) {
    %c0_i32 = arith.constant 0 : i32
    %c0_i32_0 = arith.constant 0 : i32
    %c0_i32_1 = arith.constant 0 : i32
    return %c0_i32, %c0_i32_0 : i32, i32
  }
  func.func @transform_2(%arg0: i32) -> (i32, i32, i32) {
    %c0_i32 = arith.constant 0 : i32
    %c0_i32_0 = arith.constant 0 : i32
    %c0_i32_1 = arith.constant 0 : i32
    %c0_i32_2 = arith.constant 0 : i32
    return %c0_i32, %c0_i32_0, %c0_i32_1 : i32, i32, i32
  }
  func.func @transform_3(%arg0: i32) -> (i32, i32) {
    %c0_i32 = arith.constant 0 : i32
    %c0_i32_0 = arith.constant 0 : i32
    %c0_i32_1 = arith.constant 0 : i32
    return %c0_i32, %c0_i32_0 : i32, i32
  }
}

</mosaic_0001>

<bundles_post_ra>
// kernel: squeeze.14
= control target key start
LH: loop header
LB: loop body
LE: loop exit
PB: predicated region body
PF: predicated region fallthrough
CT: control target
= control target key end

     0   :  { %vm24_vm0 = vcmask 1041409   ;;  %s27_s10 = smov 12  ;;  %vm29_vm1 = vcmask 1043458   ;;  %vm33_vm2 = vcmask 1044484   ;;  %s36_s15 = smov 96  ;;  %vm38_vm3 = vcmask 1046533   ;;  %s734_s0 = inlined_call_operand.vmem [shape: f32[1,3,32,32], index: 0, kind: input, shape index: {}]   ;;  %s735_s1 = inlined_call_operand.vmem [shape: f32[3,1024], index: 1, kind: output, shape index: {}]  }
   0x1   :  { %v375_v0 = vld [vmem:[%s734_s0 + $0x3] sm:$0x1]   ;;  %v378_v4 = vld [vmem:[%s734_s0 + $0x23] sm:$0x10]   ;;  %v380_v6 = vld [vmem:[%s734_s0 + $0x24] sm:$0x80]  }
   0x2   :  { %v376_v1 = vld [vmem:[%s734_s0 + $0x22] sm:$0x2]   ;;  %vm42_vm4 = vcmask 1047559   ;;  %v393_v9 = vld [vmem:[%s734_s0 + $0x2] sm:$0x1]   ;;  %s127_s24 = smov 12 }
   0x3   :  { %v25_v2 = vsel %vm24_vm0, %v376_v1, %v375_v0  ;;  %v377_v3 = vld [vmem:[%s734_s0 + $0xbb] ss:$-60 sm:%s27_s10]   ;;  %v394_v10 = vld [vmem:[%s734_s0 + $0x21] sm:$0x2]   ;;  %v396_v13 = vld [vmem:[%s734_s0 + $0x22] sm:$0x10]  }
   0x4   :  { %v30_v5 = vsel %vm29_vm1, %v377_v3, %v25_v2  ;;  %v379_v8 = vld [vmem:[%s734_s0 + $0x173] ss:$-60 sm:%s36_s15]   ;;  %v125_v12 = vsel %vm24_vm0, %v394_v10, %v393_v9  ;;  %s136_s27 = smov 96  ;;  %v398_v14 = vld [vmem:[%s734_s0 + $0x23] sm:$0x80]   ;;  %s59_s5 = smov 12 }
   0x5   :  { %v34_v7 = vsel %vm33_vm2, %v378_v4, %v30_v5  ;;  %v395_v16 = vld [vmem:[%s734_s0 + $0xba] ss:$-60 sm:%s127_s24]   ;;  %s439_s6 = smov 96   ;;  %v381_v19 = vld [vmem:[%s734_s0 + $0x13] sm:$0x1]   ;;  %s68_s15 = smov 96 }
   0x6   :  { %v39_v11 = vsel %vm38_vm3, %v379_v8, %v34_v7  ;;  %v397_v17 = vld [vmem:[%s734_s0 + $0x172] ss:$-60 sm:%s136_s27]   ;;  %v130_v18 = vsel %vm29_vm1, %v395_v16, %v125_v12  ;;  %v382_v20 = vld [vmem:[%s734_s0 + $0x32] sm:$0x2]   ;;  %v384_v21 = vld [vmem:[%s734_s0 + $0x33] sm:$0x10]  }
   0x7   :  { %v43_v15 = vsel %vm42_vm4, %v380_v6, %v39_v11  ;;  %v134_v22 = vsel %vm33_vm2, %v396_v13, %v130_v18  ;;  %v57_v23 = vsel %vm24_vm0, %v382_v20, %v381_v19  ;;  %v383_v24 = vld [vmem:[%s734_s0 + $0xcb] ss:$-60 sm:%s59_s5]   ;;  %s86_s18 = smov 3  ;;  %vm90_vm5 = vcmask 1042434   ;;  %s93_s23 = smov 24 }
   0x8   :  { %44 = vrot.lane.b32.xlu0 %v43_v15, %s439_s6  ;;  %v386_v25 = vld [vmem:[%s734_s0 + $0x34] sm:$0x80]   ;;  %v139_v26 = vsel %vm38_vm3, %v397_v17, %v134_v22  ;;  %v62_v27 = vsel %vm29_vm1, %v383_v24, %v57_v23  ;;  %v388_v32 = vld [vmem:[%s734_s0 + $0x2d] sm:$0x4]   ;;  %vm95_vm6 = vcmask 1044483   ;;  %vm99_vm7 = vcmask 1045509  }
   0x9   :  { %v385_v28 = vld [vmem:[%s734_s0 + $0x183] ss:$-60 sm:%s68_s15]   ;;  %v143_v30 = vsel %vm42_vm4, %v398_v14, %v139_v26  ;;  %v66_v31 = vsel %vm33_vm2, %v384_v21, %v62_v27  ;;  %s440_s28 = smov 64   ;;  %vm103_vm8 = vcmask 1046534   ;;  %s159_s4 = smov 12  ;;  %vm3_vm9 = vcmask 261120  }
   0xa   :  { %v387_v29 = vld [vmem:[%s734_s0 + $0x4b] ss:$-60 sm:%s86_s18]   ;;  %144 = vrot.lane.b32.xlu1 %v143_v30, %s440_s28  ;;  %v71_v34 = vsel %vm38_vm3, %v385_v28, %v66_v31  ;;  %v399_v41 = vld [vmem:[%s734_s0 + $0x12] sm:$0x1]   ;;  %s168_s16 = smov 96  ;;  %s186_s17 = smov 3 }
   0xb   :  { %v389_v33 = vld [vmem:[%s734_s0 + $0x2b] ss:$12 sm:%s93_s23]   ;;  %v91_v35 = vsel %vm90_vm5, %v388_v32, %v387_v29  ;;  %v75_v38 = vsel %vm42_vm4, %v386_v25, %v71_v34  ;;  %v400_v42 = vld [vmem:[%s734_s0 + $0x31] sm:$0x2]   ;;  %v402_v46 = vld [vmem:[%s734_s0 + $0x32] sm:$0x10]  }
   0xc   :  { %v390_v36 = vld [vmem:[%s734_s0 + $0x1a] sm:$0x20]   ;;  %v96_v39 = vsel %vm95_vm6, %v389_v33, %v91_v35  ;;  %76 = vrot.lane.b32.xlu0 %v75_v38, %s439_s6  ;;  %v157_v44 = vsel %vm24_vm0, %v400_v42, %v399_v41  ;;  %v401_v45 = vld [vmem:[%s734_s0 + $0xca] ss:$-60 sm:%s159_s4]   ;;  %s193_s26 = smov 24  ;;  %s227_s30 = smov 12 }
   0xd   :  { %v391_v37 = vld [vmem:[%s734_s0 + $0x39] sm:$0x40]   ;;  %v100_v43 = vsel %vm99_vm7, %v390_v36, %v96_v39  ;;  %v162_v48 = vsel %vm29_vm1, %v401_v45, %v157_v44  ;;  %v403_v49 = vld [vmem:[%s734_s0 + $0x182] ss:$-60 sm:%s168_s16]   ;;  %s236_s5 = smov 96  ;;  %s268_s18 = smov 96 }
   0xe   :  { %v392_v40 = vld [vmem:[%s734_s0 + $0x58] sm:$0x80]   ;;  %v104_v47 = vsel %vm103_vm8, %v391_v37, %v100_v43  ;;  %v404_v50 = vld [vmem:[%s734_s0 + $0x33] sm:$0x80]   ;;  %v406_v51 = vld [vmem:[%s734_s0 + $0x2c] sm:$0x4]   ;;  %v166_v53 = vsel %vm33_vm2, %v402_v46, %v162_v48 }
   0xf   :  { %v108_v52 = vsel %vm42_vm4, %v392_v40, %v104_v47  ;;  %v405_v54 = vld [vmem:[%s734_s0 + $0x4a] ss:$-60 sm:%s186_s17]   ;;  %v171_v56 = vsel %vm38_vm3, %v403_v49, %v166_v53  ;;  %v411_v63 = vld [vmem:[%s734_s0 + $0x1] sm:$0x1]   ;;  %v414_v4 = vld [vmem:[%s734_s0 + $0x21] sm:$0x10]  }
  0x10   :  { %v408_v55 = vld [vmem:[%s734_s0 + $0x19] sm:$0x20]   ;;  %109 = vrot.lane.b32.xlu1 %v108_v52, %s439_s6  ;;  %v191_v57 = vsel %vm90_vm5, %v406_v51, %v405_v54  ;;  %v175_v60 = vsel %vm42_vm4, %v404_v50, %v171_v56  ;;  %v412_v0 = vld [vmem:[%s734_s0 + $0x20] sm:$0x2]   ;;  %s259_s17 = smov 12  ;;  %s293_s7 = smov 24 }
  0x11   :  { %v407_v58 = vld [vmem:[%s734_s0 + $0x2a] ss:$12 sm:%s193_s26]   ;;  %176 = vrot.lane.b32.xlu0 %v175_v60, %s440_s28  ;;  %v225_v2 = vsel %vm24_vm0, %v412_v0, %v411_v63  ;;  %v416_v8 = vld [vmem:[%s734_s0 + $0x22] sm:$0x80]   ;;  %s441_s14 = smov 32   ;;  %vm46_vm10 = vcmask 1048320  }
  0x12   :  { %v409_v59 = vld [vmem:[%s734_s0 + $0x38] sm:$0x40]   ;;  %v196_v61 = vsel %vm95_vm6, %v407_v58, %v191_v57  ;;  %v413_v3 = vld [vmem:[%s734_s0 + $0xb9] ss:$-60 sm:%s227_s30]   ;;  %v2_v31 = vld [vmem:[%s734_s0] ss:$4 sm:$0xff]  }
  0x13   :  { %v410_v62 = vld [vmem:[%s734_s0 + $0x57] sm:$0x80]   ;;  %v200_v1 = vsel %vm99_vm7, %v408_v55, %v196_v61  ;;  %v230_v6 = vsel %vm29_vm1, %v413_v3, %v225_v2  ;;  %v415_v7 = vld [vmem:[%s734_s0 + $0x171] ss:$-60 sm:%s236_s5]   ;;  %s286_s5 = smov 3  ;;  %vm146_vm11 = vcmask 785920  }
  0x14   :  { %v204_v5 = vsel %vm103_vm8, %v409_v59, %v200_v1  ;;  %v417_v9 = vld [vmem:[%s734_s0 + $0x11] sm:$0x1]   ;;  %v234_v11 = vsel %vm33_vm2, %v414_v4, %v230_v6  ;;  %v420_v14 = vld [vmem:[%s734_s0 + $0x31] sm:$0x10]   ;;  %v422_v18 = vld [vmem:[%s734_s0 + $0x32] sm:$0x80]  }
  0x15   :  { %v208_v10 = vsel %vm42_vm4, %v410_v62, %v204_v5  ;;  %v418_v12 = vld [vmem:[%s734_s0 + $0x30] sm:$0x2]   ;;  %v239_v15 = vsel %vm38_vm3, %v415_v7, %v234_v11  ;;  %v424_v22 = vld [vmem:[%s734_s0 + $0x2b] sm:$0x4]   ;;  %v426_v23 = vld [vmem:[%s734_s0 + $0x18] sm:$0x20]  }
  0x16   :  { %v419_v13 = vld [vmem:[%s734_s0 + $0xc9] ss:$-60 sm:%s259_s17]   ;;  %209 = vrot.lane.b32.xlu1 %v208_v10, %s440_s28  ;;  %v257_v16 = vsel %vm24_vm0, %v418_v12, %v417_v9  ;;  %v243_v19 = vsel %vm42_vm4, %v416_v8, %v239_v15  ;;  %v373_v32 = vld [vmem:[%s734_s0 + $0x20] ss:$4 sm:$0xff]   ;;  %vm246_vm12 = vcmask 523520  }
  0x17   :  { %v421_v17 = vld [vmem:[%s734_s0 + $0x181] ss:$-60 sm:%s268_s18]   ;;  %v262_v20 = vsel %vm29_vm1, %v419_v13, %v257_v16  ;;  %244 = vrot.lane.b32.xlu0 %v243_v19, %s441_s14  ;;  %4 = vst.msk [vmem:[#allocation0] ss:$8 sm:$0xf] %vm3_vm9, %v2_v31  }
  0x18   :  { %v423_v21 = vld [vmem:[%s734_s0 + $0x49] ss:$-60 sm:%s286_s5]   ;;  %v266_v24 = vsel %vm33_vm2, %v420_v14, %v262_v20  ;;  %10 = vst.msk [vmem:[#allocation0 + $0x1] ss:$8 sm:$0xf] %vm3_vm9, %v373_v32  }
  0x19   :  { %v291_v25 = vsel %vm90_vm5, %v424_v22, %v423_v21  ;;  %v425_v26 = vld [vmem:[%s734_s0 + $0x29] ss:$12 sm:%s293_s7]   ;;  %v271_v28 = vsel %vm38_vm3, %v421_v17, %v266_v24  ;;  %v374_v35 = vld [vmem:[%s734_s0 + $0x40] ss:$4 sm:$0xff]  }
  0x1a   :  { %v427_v27 = vld [vmem:[%s734_s0 + $0x37] sm:$0x40]   ;;  %v296_v29 = vsel %vm95_vm6, %v425_v26, %v291_v25  ;;  %v275_v33 = vsel %vm42_vm4, %v422_v18, %v271_v28  ;;  %5 = vst.msk [vmem:[#allocation0] ss:$8 sm:$0xf0] %vm3_vm9, %v2_v31  }
  0x1b   :  { %v428_v30 = vld [vmem:[%s734_s0 + $0x56] sm:$0x80]   ;;  %v300_v34 = vsel %vm99_vm7, %v426_v23, %v296_v29  ;;  %12 = vst.msk [vmem:[#allocation0 + $0x1] ss:$8 sm:$0xf0] %vm3_vm9, %v373_v32   ;;  %276 = vrot.lane.b32.xlu1 %v275_v33, %s441_s14 }
  0x1c   :  { %v304_v36 = vsel %vm103_vm8, %v427_v27, %v300_v34  ;;  %17 = vst.msk [vmem:[#allocation0 + $0x2] ss:$8 sm:$0xf] %vm3_vm9, %v374_v35   ;;  %19 = vst.msk [vmem:[#allocation0 + $0x2] ss:$8 sm:$0xf0] %vm3_vm9, %v374_v35  }
  0x1d   :  { %v308_v37 = vsel %vm42_vm4, %v428_v30, %v304_v36 }
  0x1e   :  { %309 = vrot.lane.b32.xlu0 %v308_v37, %s441_s14 }
  0x7a   :  { %v45_v38 = vpop.permute.xlu0 %44  }
  0x7b   :  { %47 = vst.msk [vmem:[#allocation0] sm:$0x7] %vm46_vm10, %v45_v38   ;;  %49 = vst.msk [vmem:[#allocation0 + $0x5] sm:$0x38] %vm46_vm10, %v45_v38  }
  0x7c   :  { %51 = vst.msk [vmem:[#allocation0 + $0xa] sm:$0xc0] %vm46_vm10, %v45_v38   ;;  %v145_v39 = vpop.permute.xlu1 %144  }
  0x7d   :  { %147 = vst.msk [vmem:[#allocation0] sm:$0x7] %vm146_vm11, %v145_v39   ;;  %149 = vst.msk [vmem:[#allocation0 + $0x5] sm:$0x38] %vm146_vm11, %v145_v39  }
  0x7e   :  { %151 = vst.msk [vmem:[#allocation0 + $0xa] sm:$0xc0] %vm146_vm11, %v145_v39   ;;  %v77_v40 = vpop.permute.xlu0 %76  }
  0x7f   :  { %80 = vst.msk [vmem:[#allocation0 + $0x20] sm:$0x7] %vm46_vm10, %v77_v40   ;;  %82 = vst.msk [vmem:[#allocation0 + $0x25] sm:$0x38] %vm46_vm10, %v77_v40  }
  0x80   :  { %84 = vst.msk [vmem:[#allocation0 + $0x2a] sm:$0xc0] %vm46_vm10, %v77_v40  }
  0x82   :  { %v110_v41 = vpop.permute.xlu1 %109  }
  0x83   :  { %113 = vst.msk [vmem:[#allocation0 + $0x12] ss:$6 sm:$0x3] %vm46_vm10, %v110_v41   ;;  %115 = vst.msk [vmem:[#allocation0 + $0x17] sm:$0xc] %vm46_vm10, %v110_v41   ;;  %v177_v42 = vpop.permute.xlu0 %176  }
  0x84   :  { %117 = vst.msk [vmem:[#allocation0 + $0x1a] ss:$6 sm:$0x30] %vm46_vm10, %v110_v41   ;;  %119 = vst.msk [vmem:[#allocation0 + $0x33] sm:$0xc0] %vm46_vm10, %v110_v41  }
  0x85   :  { %180 = vst.msk [vmem:[#allocation0 + $0x20] sm:$0x7] %vm146_vm11, %v177_v42   ;;  %182 = vst.msk [vmem:[#allocation0 + $0x25] sm:$0x38] %vm146_vm11, %v177_v42  }
  0x86   :  { %184 = vst.msk [vmem:[#allocation0 + $0x2a] sm:$0xc0] %vm146_vm11, %v177_v42  }
  0x88   :  { %v210_v43 = vpop.permute.xlu1 %209  }
  0x89   :  { %213 = vst.msk [vmem:[#allocation0 + $0x12] ss:$6 sm:$0x3] %vm146_vm11, %v210_v43   ;;  %215 = vst.msk [vmem:[#allocation0 + $0x17] sm:$0xc] %vm146_vm11, %v210_v43   ;;  %v245_v44 = vpop.permute.xlu0 %244  }
  0x8a   :  { %217 = vst.msk [vmem:[#allocation0 + $0x1a] ss:$6 sm:$0x30] %vm146_vm11, %v210_v43   ;;  %219 = vst.msk [vmem:[#allocation0 + $0x33] sm:$0xc0] %vm146_vm11, %v210_v43  }
  0x8b   :  { %247 = vst.msk [vmem:[#allocation0] sm:$0x7] %vm246_vm12, %v245_v44   ;;  %249 = vst.msk [vmem:[#allocation0 + $0x5] sm:$0x38] %vm246_vm12, %v245_v44  }
  0x8c   :  { %251 = vst.msk [vmem:[#allocation0 + $0xa] sm:$0xc0] %vm246_vm12, %v245_v44  }
  0x8d   :  { %v277_v45 = vpop.permute.xlu1 %276  }
  0x8e   :  { %280 = vst.msk [vmem:[#allocation0 + $0x20] sm:$0x7] %vm246_vm12, %v277_v45   ;;  %282 = vst.msk [vmem:[#allocation0 + $0x25] sm:$0x38] %vm246_vm12, %v277_v45  }
  0x8f   :  { %284 = vst.msk [vmem:[#allocation0 + $0x2a] sm:$0xc0] %vm246_vm12, %v277_v45  }
  0x90   :  { %v310_v46 = vpop.permute.xlu0 %309  }
  0x91   :  { %313 = vst.msk [vmem:[#allocation0 + $0x12] ss:$6 sm:$0x3] %vm246_vm12, %v310_v46   ;;  %315 = vst.msk [vmem:[#allocation0 + $0x17] sm:$0xc] %vm246_vm12, %v310_v46  }
  0x92   :  { %317 = vst.msk [vmem:[#allocation0 + $0x1a] ss:$6 sm:$0x30] %vm246_vm12, %v310_v46   ;;  %319 = vst.msk [vmem:[#allocation0 + $0x33] sm:$0xc0] %vm246_vm12, %v310_v46  }
  0x93   :  { %v323_v47 = vld [vmem:[#allocation0] sm:$0xf]  ;;  %v327_v48 = vld [vmem:[#allocation0 + $0x8] sm:$0xf] }
  0x94   :  { %325 = vst [vmem:[%s735_s1] sm:$0xf] %v323_v47  ;;  %429 = vst [vmem:[%s735_s1 + $0x4] sm:$0xf] %v327_v48 }
  0x95   :  { %v344_v49 = vld [vmem:[#allocation0 + $0x20] sm:$0xf]  ;;  %v350_v50 = vld [vmem:[#allocation0 + $0x28] sm:$0xf] }
  0x96   :  { %432 = vst [vmem:[%s735_s1 + $0x10] sm:$0xf] %v344_v49  ;;  %433 = vst [vmem:[%s735_s1 + $0x14] sm:$0xf] %v350_v50 }
  0x98   :  { %v338_v51 = vld [vmem:[#allocation0 + $0x18] sm:$0xf]  ;;  %v332_v53 = vld [vmem:[#allocation0 + $0x10] sm:$0xf] }
  0x99   :  { %v362_v52 = vld [vmem:[#allocation0 + $0x38] sm:$0xf]  ;;  %431 = vst [vmem:[%s735_s1 + $0xc] sm:$0xf] %v338_v51  ;;  %430 = vst [vmem:[%s735_s1 + $0x8] sm:$0xf] %v332_v53 }
  0x9a   :  { %435 = vst [vmem:[%s735_s1 + $0x1c] sm:$0xf] %v362_v52  ;;  %v356_v54 = vld [vmem:[#allocation0 + $0x30] sm:$0xf] }
  0x9b   :  { %434 = vst [vmem:[%s735_s1 + $0x18] sm:$0xf] %v356_v54 }

// kernel: yolo_forward.3
= control target key start
LH: loop header
LB: loop body
LE: loop exit
PB: predicated region body
PF: predicated region fallthrough
CT: control target
= control target key end

     0   :  { %9 = vsyncpa [#allocation5], 0  ;;  %s271_s0 = inlined_call_operand.<no memory space> [shape: s32[1], index: 0, kind: input, shape index: {}]   ;;  %s272_s1 = inlined_call_operand.vmem [shape: f32[4,1024], index: 1, kind: input, shape index: {}]   ;;  %s273_s2 = inlined_call_operand.vmem [shape: f32[5,8,128], index: 2, kind: input, shape index: {}]   ;;  %s274_s3 = inlined_call_operand.vmem [shape: f32[8,128], index: 3, kind: output, shape index: {}]  }
   0x1   :  { %s18_s14 = sshll.u32 %s272_s1, 4  ;;  %s19_s14 = int_to_ptr.vmem [resolvable:$true] %s18_s14 }
   0x2   :  { %s146_s15 = scalar_lea.vmem %s19_s14, 512  ;;  %p151_p1 = scmp.lt.s32.totalorder %s19_s14, %s19_s14 }
   0x3   :  { %p147_p0 = scmp.ne.s32.totalorder %s19_s14, %s146_s15  ;;  %p152_p2 = scmp.lt.s32.totalorder %s146_s15, %s146_s15 }
   0x5   :  { %p153_p3 = por %p152_p2, %p151_p1 }
   0x7   :  { %p154_p4 = pnand %p153_p3, %p147_p0 }
   0x9   :  { %157 = shalt.err (!%p154_p4)
}
   0xa   :  { %s168_s16 = smov [#allocation4]  }
   0xb   :  { %21 = dma.vmem_to_smem %s19_s14, 512, %s168_s16, [#allocation5]  }
   0xc   :  { %162 = dma.done.wait [#allocation5], 512  }
   0xd   :  { %163 = vsyncadd [#allocation5], 4294966784 }
   0xe   :  { %27 = sfence }
   0xf   :  { %v197_v0 = vld [vmem:[%s273_s2] sm:$0xff]  ;;  %v202_v1 = vld [vmem:[%s273_s2 + $0x8] sm:$0xff]  ;;  %v207_v2 = vld [vmem:[%s273_s2 + $0x10] sm:$0xff]  ;;  %v42_v3 = vlaneseq  ;;  %p49_p5 = scmp.lt.s32.totalorder %s271_s0, 1024  ;;  %v169_v7 = vmov 0.0   ;;  %p132_p6 = scmp.le.s32.totalorder %s271_s0, 0 }
  0x10   :  { %v215_v4 = vld [vmem:[%s273_s2 + $0x18] sm:$0xff]  ;;  %v128_v5 = vld [vmem:[%s273_s2 + $0x20] sm:$0xff]  ;;  %v37_v6 = vsub.f32 %v207_v2, %v197_v0  ;;  %41 = vst [vmem:[%s274_s3] sm:$0xff] %v169_v7  ;;  %s239_s7 = smov (!%p132_p6), 0  }
  0x11   :  { %v38_v8 = vsub.f32 %v215_v4, %v202_v1  ;;  %40 = vst [vmem:[#allocation2] sm:$0xff] %v128_v5  ;;  %v43_v9 = vshrl.u32 %v42_v3, 7  ;;  %v46_v10 = vand.u32 127, %v42_v3  ;;  %s230_s5 = scalar_select %p49_p5, %s271_s0, 1024 }
  0x12   :  { %122 = sbr.rel (%p132_p6) target bundleno = 194 (0xc2), region = 41 }
  0x13   :  { %v232_v11 = vmul.f32 %v38_v8, %v37_v6  ;;  %v44_v12 = vmul.u32 128, %v43_v9 }
  0x15   :  { %v234_v13 = vadd.s32 %v46_v10, %v44_v12 }
  0x19 LB: > { %v76_v14 = vld [vmem:[#allocation2] sm:$0xff]  ;;  %v77_v15 = vstv %s166_s7  ;;  %s57_s0 = sshra.s32 %s166_s7, 7  ;;  %s61_s8 = sand.u32 127, %s166_s7  ;;  %v170_v42 = vmov 0.0   ;;  %s166_s7 = sphi %s239_s7, %s54_s7  }
  0x1a   : > { %vm246_vm0 = vcmp.eq.s32.totalorder %v234_v13, %v77_v15  ;;  %s130_s9 = sshll.u32 %s57_s0, 9  ;;  %s64_s10 = sadd.s32 128, %s61_s8  ;;  %v88_v41 = vld [vmem:[%s274_s3] sm:$0xff] }
  0x1b   : > { %v79_v17 = vsel %vm246_vm0, %v76_v14, 0.0  ;;  %s67_s11 = sadd.s32 256, %s61_s8  ;;  %s70_s12 = sadd.s32 384, %s61_s8 }
  0x1c   : > { %80 = vmax.xlane.f32.xlu0 %v79_v17  ;;  %s62_s13 = sadd.s32 %s130_s9, %s61_s8  ;;  %s65_s14 = sadd.s32 %s130_s9, %s64_s10 }
  0x1d   : > { %s68_s15 = sadd.s32 %s130_s9, %s67_s11  ;;  %s71_s16 = sadd.s32 %s130_s9, %s70_s12 }
  0x1e   : > { %s63_s17 = sld [smem:[#allocation4 + %s62_s13]]  ;;  %s54_s7 = sadd.s32 1, %s166_s7  }
  0x1f   : > { %s66_s18 = sld [smem:[#allocation4 + %s65_s14]]  ;;  %p53_p7 = scmp.ge.s32.totalorder %s54_s7, %s230_s5 }
  0x20   : > { %s69_s19 = sld [smem:[#allocation4 + %s68_s15]] }
  0x21   : > { %s72_s1 = sld [smem:[#allocation4 + %s71_s16]] }
  0x24   : > { %v93_v19 = vstv %s63_s17 }
  0x25   : > { %v99_v21 = vstv %s66_s18  ;;  %v94_v23 = vmax.f32 %v197_v0, %v93_v19 }
  0x26   : > { %v91_v18 = vstv %s69_s19  ;;  %s73_s20 = ssub.f32 %s69_s19, %s63_s17  ;;  %v100_v25 = vmax.f32 %v202_v1, %v99_v21 }
  0x27   : > { %v97_v20 = vstv %s72_s1  ;;  %v92_v22 = vmin.f32 %v207_v2, %v91_v18  ;;  %s74_s21 = ssub.f32 %s72_s1, %s66_s18 }
  0x28   : > { %v98_v24 = vmin.f32 %v215_v4, %v97_v20 }
  0x29   : > { %v95_v26 = vsub.f32 %v92_v22, %v94_v23  ;;  %s75_s22 = smul.f32 %s74_s21, %s73_s20 }
  0x2a   : > { %v101_v27 = vsub.f32 %v98_v24, %v100_v25 }
  0x2b   : > { %v96_v28 = vmax.f32 %v95_v26, 0.0  ;;  %v104_v30 = vstv %s75_s22 }
  0x2c   : > { %v102_v29 = vmax.f32 %v101_v27, 0.0  ;;  %v105_v32 = vadd.f32 %v104_v30, %v232_v11 }
  0x2e   : > { %v103_v31 = vmul.f32 %v102_v29, %v96_v28 }
  0x30   : > { %v106_v33 = vsub.f32 %v105_v32, %v103_v31 }
  0x32   : > { %v107_v37 = vmul.f32 0.45, %v106_v33 }
  0x34   : > { %vm108_vm1 = vcmp.gt.f32.partialorder %v103_v31, %v107_v37 }
  0x35   : > { %v131_v43 = vsel %vm108_vm1, 1.0, %v170_v42 }
  0xa9   : > { %v81_v34 = vpop.xlane.xlu0 %80 }
  0xaa   : > { %v82_v35 = vrot.slane %v81_v34, 4 }
  0xac   : > { %v83_v36 = vmax.f32 %v81_v34, %v82_v35 }
  0xae   : > { %v84_v38 = vrot.slane %v83_v36, 2 }
  0xb0   : > { %v85_v39 = vmax.f32 %v83_v36, %v84_v38 }
  0xb2   : > { %v86_v40 = vrot.slane %v85_v39, 1 }
  0xb4   : > { %v87_v44 = vmax.f32 %v85_v39, %v86_v40 }
  0xb6   : > { %v89_v45 = vsel %vm246_vm0, %v87_v44, %v88_v41  ;;  %v111_v46 = vmul.f32 %v131_v43, %v87_v44 }
  0xb7   : > { %90 = vst [vmem:[%s274_s3] sm:$0xff] %v89_v45 }
  0xb8   : > { %v112_v47 = vsub.f32 1.0, %v111_v46 }
  0xba   : > { %v113_v48 = vmul.f32 %v112_v47, %v76_v14 }
  0xbb   :  { %56 = sbr.rel (!%p53_p7) target bundleno = 25 (0x19), region = 47 }
  0xbc   : > { %114 = vst [vmem:[#allocation2] sm:$0xff] %v113_v48 }
  0xc2 PF:  { %119 = vsyncpa [#allocation5], 1 }

// kernel: yolo_forward.2
= control target key start
LH: loop header
LB: loop body
LE: loop exit
PB: predicated region body
PF: predicated region fallthrough
CT: control target
= control target key end

     0   :  { %vm49_vm0 = vcmask 1042432   ;;  %v3225_v2 = vmov 0.0   ;;  %v2394_v7 = vmov 0   ;;  %vm45_vm1 = vcmask 23552   ;;  %s3214_s0 = inlined_call_operand.vmem [shape: f32[3,1024], index: 0, kind: input, shape index: {}]   ;;  %s3215_s1 = inlined_call_operand.vmem [shape: f32[8,3], index: 1, kind: input, shape index: {}]   ;;  %s3216_s2 = inlined_call_operand.vmem [shape: f32[8,1], index: 2, kind: input, shape index: {}]   ;;  %s3217_s4 = inlined_call_operand.vmem [shape: f32[16,1], index: 4, kind: input, shape index: {}]   ;;  %s3218_s6 = inlined_call_operand.vmem [shape: f32[9,1], index: 6, kind: input, shape index: {}]   ;;  %s3219_s3 = inlined_call_operand.vmem [shape: f32[16,8], index: 3, kind: input, shape index: {}]   ;;  %s3220_s5 = inlined_call_operand.vmem [shape: f32[9,16], index: 5, kind: input, shape index: {}]   ;;  %s3221_s7 = inlined_call_operand.vmem [shape: f32[8,1024], index: 7, kind: output, shape index: {}]  }
   0x1   :  { %v27_v0 = vld [vmem:[%s3214_s0] sm:$0x77]  ;;  %v28_v1 = vld [vmem:[%s3214_s0 + $0x8] sm:$0x77]  ;;  %130 = vmatprep.mubr.f32.mxu0 %v3225_v2  ;;  %201 = vmatprep.mubr.f32.mxu1 %v3225_v2  ;;  %v29_v5 = vld [vmem:[%s3214_s0 + $0x10] sm:$0x77] }
   0x2   :  { %v41_v3 = vcombine.high %v27_v0, %v27_v0  ;;  %v42_v4 = vcombine.high %v28_v1, %v28_v1  ;;  %v30_v6 = vld [vmem:[%s3214_s0 + $0x18] sm:$0x77]  ;;  %2227 = vset.pattern.permute.xlu0 %v2394_v7  ;;  %v31_v8 = vld [vmem:[%s3216_s2] sm:$0xff]  ;;  %2228 = vset.pattern.permute.xlu1 %v2394_v7  ;;  %v43_v10 = vcombine.high %v29_v5, %v29_v5  ;;  %v850_v13 = vld [vmem:[%s3218_s6 + $0x8] sm:$0x1]  ;;  %vm420_vm2 = vcmask 64512  }
   0x3   :  { %v26_v9 = vld [vmem:[%s3215_s1] sm:$0xff]  ;;  %v44_v11 = vcombine.high %v30_v6, %v30_v6  ;;  %34 = vperm.xlu0 %2227, %v31_v8   ;;  %v409_v14 = vld [vmem:[%s3217_s4 + $0x8] sm:$0xff]  ;;  %vm861_vm3 = vcmask 130048   ;;  %2206 = vst [vmem:[%s3221_s7 + $0x7] ss:$8 sm:$0xf] %v3225_v2 }
   0x4   :  { %2110 = vmatprep.subr.msk.mxu0 %vm49_vm0, %v41_v3  ;;  %2113 = vmatprep.subr.msk.mxu1 %vm49_vm0, %v42_v4  ;;  %v408_v12 = vld [vmem:[%s3217_s4] sm:$0xff]  ;;  %2207 = vst [vmem:[%s3221_s7 + $0x7] ss:$8 sm:$0xf0] %v3225_v2  ;;  %vm1224_vm4 = vcmask 1047557   ;;  %vm1226_vm5 = vcmask 1040384  }
   0x5   :  { %2111 = vmatpush1.msk.msra.mxu0 %vm49_vm0, %v27_v0  ;;  %2114 = vmatpush1.msk.msra.mxu1 %vm49_vm0, %v28_v1  ;;  %v849_v15 = vld [vmem:[%s3218_s6] sm:$0xff] }
   0x6   :  { %2112 = vmatmul.mubr.msk.f32.vlgmr.msra.gmra.mrb[0].mxu0 %vm45_vm1, %v26_v9  ;;  %2115 = vmatmul.mubr.msk.f32.vlgmr.msra.gmra.mrb[0].mxu1 %vm45_vm1, %v26_v9  ;;  %v406_v1 = vld [vmem:[%s3219_s3] sm:$0xff] }
   0x7   :  { %2116 = vmatprep.subr.msk.mxu0 %vm49_vm0, %v43_v10  ;;  %2119 = vmatprep.subr.msk.mxu1 %vm49_vm0, %v44_v11  ;;  %v407_v10 = vld [vmem:[%s3219_s3 + $0x8] sm:$0xff] }
   0x8   :  { %2117 = vmatpush1.msk.msra.mxu0 %vm49_vm0, %v29_v5  ;;  %272 = vmatprep.mubr.f32.mxu0 %v3225_v2 }
   0x9   :  { %2120 = vmatpush1.msk.msra.mxu1 %vm49_vm0, %v30_v6  ;;  %343 = vmatprep.mubr.f32.mxu1 %v3225_v2 }
   0xa   :  { %2118 = vmatmul.mubr.msk.f32.vlgmr.msra.gmra.mrb[2].mxu0 %vm45_vm1, %v26_v9  ;;  %2121 = vmatmul.mubr.msk.f32.vlgmr.msra.gmra.mrb[2].mxu1 %vm45_vm1, %v26_v9 }
   0xb   :  { %412 = vperm.xlu0 %2227, %v408_v12   ;;  %491 = vmatprep.mubr.f32.mxu0 %v3225_v2 }
   0xc   :  { %568 = vmatprep.mubr.f32.mxu1 %v3225_v2  ;;  %417 = vperm.xlu1 %2228, %v409_v14  }
   0xf   :  { %858 = vperm.xlu0 %2227, %v850_v13  }
  0x10   :  { %853 = vperm.xlu1 %2228, %v849_v15  }
  0x82   :  { %v35_v16 = vpop.permute.xlu0 %34 }
  0x8a   :  { %v413_v12 = vpop.permute.xlu0 %412 }
  0xd9   :  { %v132_v17 = vpop.f32.mrb[0].mxu0  ;;  %v203_v18 = vpop.f32.mrb[0].mxu1 }
  0xda   :  { %v133_v19 = vadd.f32 %v132_v17, %v35_v16  ;;  %v2484_v20 = vadd.f32 %v203_v18, %v35_v16  ;;  %v134_v21 = vpop.f32.mrb[1].mxu0  ;;  %v205_v22 = vpop.f32.mrb[1].mxu1 }
  0xdb   :  { %v135_v23 = vadd.f32 %v134_v21, %v35_v16  ;;  %v206_v24 = vadd.f32 %v205_v22, %v35_v16 }
  0xdc   :  { %v2122_v25 = vmul.f32 -1.442695, %v133_v19  ;;  %v2124_v26 = vmul.f32 -1.442695, %v2484_v20 }
  0xdd   :  { %v2123_v27 = vmul.f32 -1.442695, %v135_v23  ;;  %v2125_v28 = vmul.f32 -1.442695, %v206_v24  ;;  %v274_v29 = vpop.f32.mrb[2].mxu0  ;;  %v345_v30 = vpop.f32.mrb[2].mxu1 }
  0xde   :  { %2233 = vpow2.f32 %v2122_v25  ;;  %v275_v31 = vadd.f32 %v274_v29, %v35_v16  ;;  %v2487_v32 = vadd.f32 %v345_v30, %v35_v16  ;;  %v276_v33 = vpop.f32.mrb[3].mxu0  ;;  %v347_v34 = vpop.f32.mrb[3].mxu1 }
  0xdf   :  { %2235 = vpow2.f32 %v2124_v26  ;;  %v277_v35 = vadd.f32 %v276_v33, %v35_v16  ;;  %v348_v36 = vadd.f32 %v347_v34, %v35_v16 }
  0xe0   :  { %2237 = vpow2.f32 %v2123_v27  ;;  %v2126_v37 = vmul.f32 -1.442695, %v275_v31  ;;  %v2128_v38 = vmul.f32 -1.442695, %v2487_v32 }
  0xe1   :  { %2239 = vpow2.f32 %v2125_v28  ;;  %v2127_v39 = vmul.f32 -1.442695, %v277_v35  ;;  %v2129_v40 = vmul.f32 -1.442695, %v348_v36 }
  0xe2   :  { %2241 = vpow2.f32 %v2126_v37 }
  0xe3   :  { %2243 = vpow2.f32 %v2128_v38 }
  0xe4   :  { %2245 = vpow2.f32 %v2127_v39 }
  0xe5   :  { %2247 = vpow2.f32 %v2129_v40 }
  0xe8   :  { %v2234_v41 = vpop.eup %2233 }
  0xe9   :  { %v2236_v42 = vpop.eup %2235  ;;  %v374_v43 = vadd.f32 1.0, %v2234_v41 }
  0xea   :  { %v2238_v44 = vpop.eup %2237  ;;  %v376_v45 = vadd.f32 1.0, %v2236_v42 }
  0xeb   :  { %v2240_v46 = vpop.eup %2239  ;;  %2249 = vrcp.f32 %v374_v43  ;;  %v375_v47 = vadd.f32 1.0, %v2238_v44 }
  0xec   :  { %v2242_v48 = vpop.eup %2241  ;;  %2251 = vrcp.f32 %v376_v45  ;;  %v377_v49 = vadd.f32 1.0, %v2240_v46 }
  0xed   :  { %v2244_v50 = vpop.eup %2243  ;;  %2253 = vrcp.f32 %v375_v47  ;;  %v378_v51 = vadd.f32 1.0, %v2242_v48 }
  0xee   :  { %v2246_v52 = vpop.eup %2245  ;;  %2255 = vrcp.f32 %v377_v49  ;;  %v380_v53 = vadd.f32 1.0, %v2244_v50 }
  0xef   :  { %v2248_v54 = vpop.eup %2247  ;;  %2257 = vrcp.f32 %v378_v51  ;;  %v379_v55 = vadd.f32 1.0, %v2246_v52 }
  0xf0   :  { %2259 = vrcp.f32 %v380_v53  ;;  %v381_v56 = vadd.f32 1.0, %v2248_v54 }
  0xf1   :  { %2261 = vrcp.f32 %v379_v55 }
  0xf2   :  { %2263 = vrcp.f32 %v381_v56 }
  0xf5   :  { %v2250_v57 = vpop.eup %2249 }
  0xf6   :  { %v2252_v58 = vpop.eup %2251  ;;  %v398_v63 = vmul.f32 %v2250_v57, %v133_v19 }
  0xf7   :  { %v2254_v59 = vpop.eup %2253  ;;  %v400_v4 = vmul.f32 %v2252_v58, %v2484_v20 }
  0xf8   :  { %v2256_v60 = vpop.eup %2255  ;;  %v399_v61 = vmul.f32 %v2254_v59, %v135_v23  ;;  %v2524_v23 = vpop.permute.xlu1 %417 }
  0xf9   :  { %v2258_v62 = vpop.eup %2257  ;;  %v401_v0 = vmul.f32 %v2256_v60, %v206_v24 }
  0xfa   :  { %v2260_v3 = vpop.eup %2259  ;;  %427 = vmatprep.subr.mxu0 %v399_v61  ;;  %v402_v8 = vmul.f32 %v2258_v62, %v275_v31 }
  0xfb   :  { %v2262_v5 = vpop.eup %2261  ;;  %504 = vmatprep.subr.mxu1 %v401_v0  ;;  %428 = vmatpush1.msra.mxu0 %v398_v63  ;;  %v404_v11 = vmul.f32 %v2260_v3, %v2487_v32 }
  0xfc   :  { %v2264_v6 = vpop.eup %2263  ;;  %v403_v7 = vmul.f32 %v2262_v5, %v277_v35  ;;  %505 = vmatpush1.msra.mxu1 %v400_v4  ;;  %2130 = vmatmul.mubr.msk.f32.vlgmr.msra.gmra.mrb[4].mxu0 %vm420_vm2, %v406_v1 }
  0xfd   :  { %v405_v9 = vmul.f32 %v2264_v6, %v348_v36  ;;  %2132 = vmatmul.mubr.msk.f32.vlgmr.msra.gmra.mrb[4].mxu1 %vm420_vm2, %v406_v1  ;;  %497 = vmatprep.mubr.f32.mxu0 %v3225_v2 }
  0xfe   :  { %581 = vmatprep.subr.mxu0 %v403_v7  ;;  %574 = vmatprep.mubr.f32.mxu1 %v3225_v2 }
  0xff   :  { %658 = vmatprep.subr.mxu1 %v405_v9  ;;  %582 = vmatpush1.msra.mxu0 %v402_v8 }
 0x100   :  { %659 = vmatpush1.msra.mxu1 %v404_v11  ;;  %2131 = vmatmul.mubr.msk.f32.gmra.mrb[6].mxu0 %vm420_vm2, %v407_v10 }
 0x101   :  { %2133 = vmatmul.mubr.msk.f32.gmra.mrb[6].mxu1 %vm420_vm2, %v407_v10  ;;  %645 = vmatprep.mubr.f32.mxu0 %v3225_v2 }
 0x102   :  { %722 = vmatprep.mubr.f32.mxu1 %v3225_v2 }
 0x104   :  { %2134 = vmatmul.mubr.msk.f32.vlgmr.msra.gmra.mrb[8].mxu0 %vm420_vm2, %v406_v1 }
 0x105   :  { %2136 = vmatmul.mubr.msk.f32.vlgmr.msra.gmra.mrb[8].mxu1 %vm420_vm2, %v406_v1  ;;  %651 = vmatprep.mubr.f32.mxu0 %v3225_v2 }
 0x106   :  { %728 = vmatprep.mubr.f32.mxu1 %v3225_v2 }
 0x108   :  { %2135 = vmatmul.mubr.msk.f32.gmra.mrb[10].mxu0 %vm420_vm2, %v407_v10 }
 0x109   :  { %2137 = vmatmul.mubr.msk.f32.gmra.mrb[10].mxu1 %vm420_vm2, %v407_v10  ;;  %932 = vmatprep.mubr.f32.mxu0 %v3225_v2 }
 0x10a   :  { %1009 = vmatprep.mubr.f32.mxu1 %v3225_v2 }
 0x1cf   :  { %v493_v13 = vpop.f32.mrb[4].mxu0 }
 0x1d0   :  { %v2514_v14 = vadd.f32 %v493_v13, %v413_v12  ;;  %v570_v15 = vpop.f32.mrb[4].mxu1  ;;  %v495_v16 = vpop.f32.mrb[5].mxu0 }
 0x1d1   :  { %v2516_v17 = vadd.f32 %v570_v15, %v413_v12  ;;  %v2518_v18 = vadd.f32 %v495_v16, %v413_v12  ;;  %v572_v19 = vpop.f32.mrb[5].mxu1 }
 0x1d2   :  { %v2138_v20 = vmul.f32 -1.442695, %v2514_v14  ;;  %v2521_v21 = vadd.f32 %v572_v19, %v413_v12 }
 0x1d3   :  { %v2140_v22 = vmul.f32 -1.442695, %v2516_v17  ;;  %v2139_v24 = vmul.f32 -1.442695, %v2518_v18  ;;  %v499_v25 = vpop.f32.mrb[6].mxu0 }
 0x1d4   :  { %2265 = vpow2.f32 %v2138_v20  ;;  %v2141_v26 = vmul.f32 -1.442695, %v2521_v21  ;;  %v2529_v27 = vadd.f32 %v499_v25, %v2524_v23  ;;  %v576_v28 = vpop.f32.mrb[6].mxu1  ;;  %v501_v29 = vpop.f32.mrb[7].mxu0 }
 0x1d5   :  { %2267 = vpow2.f32 %v2140_v22  ;;  %v2532_v30 = vadd.f32 %v576_v28, %v2524_v23  ;;  %v2535_v31 = vadd.f32 %v501_v29, %v2524_v23  ;;  %v578_v32 = vpop.f32.mrb[7].mxu1 }
 0x1d6   :  { %2269 = vpow2.f32 %v2139_v24  ;;  %v2146_v33 = vmul.f32 -1.442695, %v2529_v27  ;;  %v2539_v34 = vadd.f32 %v578_v32, %v2524_v23 }
 0x1d7   :  { %2271 = vpow2.f32 %v2141_v26  ;;  %v2148_v35 = vmul.f32 -1.442695, %v2532_v30  ;;  %v2147_v36 = vmul.f32 -1.442695, %v2535_v31  ;;  %v647_v37 = vpop.f32.mrb[8].mxu0 }
 0x1d8   :  { %2273 = vpow2.f32 %v2146_v33  ;;  %v2149_v38 = vmul.f32 -1.442695, %v2539_v34  ;;  %v2544_v39 = vadd.f32 %v647_v37, %v413_v12  ;;  %v724_v40 = vpop.f32.mrb[8].mxu1  ;;  %v649_v41 = vpop.f32.mrb[9].mxu0 }
 0x1d9   :  { %2275 = vpow2.f32 %v2148_v35  ;;  %v2546_v42 = vadd.f32 %v724_v40, %v413_v12  ;;  %v2548_v43 = vadd.f32 %v649_v41, %v413_v12  ;;  %v726_v44 = vpop.f32.mrb[9].mxu1 }
 0x1da   :  { %2277 = vpow2.f32 %v2147_v36  ;;  %v2142_v45 = vmul.f32 -1.442695, %v2544_v39  ;;  %v2557_v61 = vadd.f32 %v726_v44, %v413_v12 }
 0x1db   :  { %2279 = vpow2.f32 %v2149_v38  ;;  %v2144_v46 = vmul.f32 -1.442695, %v2546_v42  ;;  %v2143_v47 = vmul.f32 -1.442695, %v2548_v43  ;;  %v653_v48 = vpop.f32.mrb[10].mxu0 }
 0x1dc   :  { %2281 = vpow2.f32 %v2142_v45  ;;  %v2554_v49 = vadd.f32 %v653_v48, %v2524_v23  ;;  %v730_v50 = vpop.f32.mrb[10].mxu1  ;;  %v655_v51 = vpop.f32.mrb[11].mxu0  ;;  %v2145_v7 = vmul.f32 -1.442695, %v2557_v61 }
 0x1dd   :  { %v732_v52 = vpop.f32.mrb[11].mxu1  ;;  %2283 = vpow2.f32 %v2144_v46  ;;  %v2561_v10 = vadd.f32 %v730_v50, %v2524_v23  ;;  %v2564_v12 = vadd.f32 %v655_v51, %v2524_v23 }
 0x1de   :  { %v2266_v53 = vpop.eup %2265  ;;  %v2150_v54 = vmul.f32 -1.442695, %v2554_v49  ;;  %2285 = vpow2.f32 %v2143_v47  ;;  %v2567_v15 = vadd.f32 %v732_v52, %v2524_v23 }
 0x1df   :  { %v2268_v55 = vpop.eup %2267  ;;  %v783_v56 = vadd.f32 1.0, %v2266_v53  ;;  %v2152_v20 = vmul.f32 -1.442695, %v2561_v10  ;;  %v2151_v25 = vmul.f32 -1.442695, %v2564_v12 }
 0x1e0   :  { %v2270_v57 = vpop.eup %2269  ;;  %v785_v58 = vadd.f32 1.0, %v2268_v55  ;;  %2287 = vpow2.f32 %v2150_v54  ;;  %v2153_v28 = vmul.f32 -1.442695, %v2567_v15 }
 0x1e1   :  { %v2272_v59 = vpop.eup %2271  ;;  %2289 = vrcp.f32 %v783_v56  ;;  %v784_v60 = vadd.f32 1.0, %v2270_v57 }
 0x1e2   :  { %v2274_v62 = vpop.eup %2273  ;;  %2291 = vrcp.f32 %v785_v58  ;;  %v786_v63 = vadd.f32 1.0, %v2272_v59 }
 0x1e3   :  { %v2276_v0 = vpop.eup %2275  ;;  %2293 = vrcp.f32 %v784_v60  ;;  %v791_v1 = vadd.f32 1.0, %v2274_v62 }
 0x1e4   :  { %v2278_v3 = vpop.eup %2277  ;;  %2295 = vrcp.f32 %v786_v63  ;;  %v793_v4 = vadd.f32 1.0, %v2276_v0 }
 0x1e5   :  { %v2280_v5 = vpop.eup %2279  ;;  %2297 = vrcp.f32 %v791_v1  ;;  %v792_v6 = vadd.f32 1.0, %v2278_v3 }
 0x1e6   :  { %v2282_v8 = vpop.eup %2281  ;;  %2299 = vrcp.f32 %v793_v4  ;;  %v794_v9 = vadd.f32 1.0, %v2280_v5 }
 0x1e7   :  { %2301 = vrcp.f32 %v792_v6  ;;  %v787_v11 = vadd.f32 1.0, %v2282_v8  ;;  %v2284_v13 = vpop.eup %2283 }
 0x1e8   :  { %2303 = vrcp.f32 %v794_v9  ;;  %v2286_v16 = vpop.eup %2285  ;;  %v789_v51 = vadd.f32 1.0, %v2284_v13 }
 0x1e9   :  { %2305 = vpow2.f32 %v2145_v7  ;;  %v788_v53 = vadd.f32 1.0, %v2286_v16 }
 0x1ea   :  { %v2288_v19 = vpop.eup %2287  ;;  %2307 = vrcp.f32 %v787_v11 }
 0x1eb   :  { %v2290_v22 = vpop.eup %2289  ;;  %v795_v24 = vadd.f32 1.0, %v2288_v19 }
 0x1ec   :  { %v2292_v26 = vpop.eup %2291  ;;  %v831_v35 = vmul.f32 %v2290_v22, %v2514_v14 }
 0x1ed   :  { %v2294_v29 = vpop.eup %2293  ;;  %2309 = vrcp.f32 %v795_v24  ;;  %v833_v38 = vmul.f32 %v2292_v26, %v2516_v17 }
 0x1ee   :  { %v2296_v32 = vpop.eup %2295  ;;  %2311 = vpow2.f32 %v2152_v20  ;;  %v832_v44 = vmul.f32 %v2294_v29, %v2518_v18  ;;  %v847_v18 = vld [vmem:[%s3220_s5] sm:$0xff] }
 0x1ef   :  { %v2298_v33 = vpop.eup %2297  ;;  %2313 = vpow2.f32 %v2151_v25  ;;  %v834_v48 = vmul.f32 %v2296_v32, %v2521_v21 }
 0x1f0   :  { %v2300_v23 = vpop.eup %2299  ;;  %v839_v36 = vmul.f32 %v2298_v33, %v2529_v27  ;;  %2315 = vpow2.f32 %v2153_v28  ;;  %v2640_v28 = vpop.permute.xlu1 %853 }
 0x1f1   :  { %v2302_v37 = vpop.eup %2301  ;;  %v841_v40 = vmul.f32 %v2300_v23, %v2532_v30  ;;  %2317 = vrcp.f32 %v789_v51 }
 0x1f2   :  { %v2304_v41 = vpop.eup %2303  ;;  %v2210_v45 = vpack.c.bf16 %v839_v36, %v831_v35  ;;  %v840_v46 = vmul.f32 %v2302_v37, %v2535_v31  ;;  %2319 = vrcp.f32 %v788_v53  ;;  %v2395_v35 = vmov 1966171168  }
 0x1f3   :  { %v2306_v47 = vpop.eup %2305  ;;  %v2214_v50 = vpack.c.bf16 %v841_v40, %v833_v38  ;;  %v842_v14 = vmul.f32 %v2304_v41, %v2539_v34  ;;  %v1666_v36 = vunpack.c.l.s4 %v2395_v35 }
 0x1f4   :  { %v2208_v27 = vpack.c.bf16 %v840_v46, %v832_v44  ;;  %v2308_v52 = vpop.eup %2307  ;;  %v790_v17 = vadd.f32 1.0, %v2306_v47 }
 0x1f5   :  { %v2212_v54 = vpack.c.bf16 %v842_v14, %v834_v48  ;;  %v835_v21 = vmul.f32 %v2308_v52, %v2544_v39  ;;  %v848_v39 = vld [vmem:[%s3220_s5 + $0x8] sm:$0x1] }
 0x1f6   :  { %2209 = vmatprep.subr.bf16.mxu0 %v2208_v27  ;;  %2321 = vrcp.f32 %v790_v17  ;;  %v1667_v17 = vunpack.c.0.s8 %v1666_v36 }
 0x1f7   :  { %v2310_v30 = vpop.eup %2309  ;;  %2213 = vmatprep.subr.bf16.mxu1 %v2212_v54  ;;  %2211 = vmatpush1.bf16.msra.mxu0 %v2210_v45  ;;  %v2676_v54 = vpop.permute.xlu0 %858 }
 0x1f8   :  { %v2312_v31 = vpop.eup %2311  ;;  %v843_v34 = vmul.f32 %v2310_v30, %v2554_v49  ;;  %2215 = vmatpush1.bf16.msra.mxu1 %v2214_v50 }
 0x1f9   :  { %v2314_v55 = vpop.eup %2313  ;;  %v797_v56 = vadd.f32 1.0, %v2312_v31 }
 0x1fa   :  { %v2316_v57 = vpop.eup %2315  ;;  %v2218_v58 = vpack.c.bf16 %v843_v34, %v835_v21  ;;  %v796_v59 = vadd.f32 1.0, %v2314_v55  ;;  %2154 = vmatmul.mubr.msk.f32.vlgmr.msra.gmra.mrb[12].mxu0 %vm861_vm3, %v847_v18 }
 0x1fb   :  { %2323 = vrcp.f32 %v797_v56  ;;  %v798_v60 = vadd.f32 1.0, %v2316_v57  ;;  %2156 = vmatmul.mubr.msk.f32.vlgmr.msra.gmra.mrb[12].mxu1 %vm861_vm3, %v847_v18  ;;  %938 = vmatprep.mubr.f32.mxu0 %v3225_v2  ;;  %v2318_v49 = vpop.eup %2317 }
 0x1fc   :  { %2325 = vrcp.f32 %v796_v59  ;;  %1015 = vmatprep.mubr.f32.mxu1 %v3225_v2  ;;  %v2320_v62 = vpop.eup %2319  ;;  %v837_v3 = vmul.f32 %v2318_v49, %v2546_v42  ;;  %v1346_v42 = vlaneseq }
 0x1fd   :  { %2327 = vrcp.f32 %v798_v60  ;;  %v836_v6 = vmul.f32 %v2320_v62, %v2548_v43 }
 0x1fe   :  { %2155 = vmatmul.mubr.msk.f32.gmra.mrb[14].mxu0 %vm861_vm3, %v848_v39  ;;  %v2616_v43 = vand.u32 127, %v1346_v42 }
 0x1ff   :  { %2157 = vmatmul.mubr.msk.f32.gmra.mrb[14].mxu1 %vm861_vm3, %v848_v39  ;;  %1086 = vmatprep.mubr.f32.mxu0 %v3225_v2 }
 0x200   :  { %1163 = vmatprep.mubr.f32.mxu1 %v3225_v2  ;;  %v2322_v63 = vpop.eup %2321  ;;  %v2632_v20 = vadd.s32 384, %v2616_v43  ;;  %v2637_v25 = vadd.s32 512, %v2616_v43  ;;  %v2686_v56 = vadd.s32 768, %v2616_v43  ;;  %v2723_v35 = vadd.s32 640, %v2616_v43 }
 0x201   :  { %v838_v8 = vmul.f32 %v2322_v63, %v2557_v61  ;;  %v1467_v61 = vcvt.s32.f32 %v2616_v43 }
 0x202   :  { %v1470_v33 = vcvt.s32.f32 %v2632_v20  ;;  %v1471_v47 = vcvt.s32.f32 %v2637_v25  ;;  %3237 = vst [vmem:[#allocation3_spill] sm:$0xff] %v2686_v56  ;;  %3238 = vst [vmem:[#allocation4_spill] sm:$0xff] %v2723_v35 }
 0x203   :  { %v2629_v19 = vmul.f32 0.03125, %v1467_v61 }
 0x204   :  { %v2674_v53 = vmul.f32 0.03125, %v1470_v33  ;;  %v2683_v55 = vmul.f32 0.03125, %v1471_v47 }
 0x205   :  { %v2324_v0 = vpop.eup %2323  ;;  %v1493_v32 = vfloor.f32 %v2629_v19 }
 0x206   :  { %v2326_v1 = vpop.eup %2325  ;;  %v845_v4 = vmul.f32 %v2324_v0, %v2561_v10  ;;  %v2620_v10 = vadd.s32 256, %v2616_v43  ;;  %3236 = vst [vmem:[#allocation2_spill] sm:$0xff] %v2683_v55 }
 0x207   :  { %v2328_v5 = vpop.eup %2327  ;;  %v844_v7 = vmul.f32 %v2326_v1, %v2564_v12  ;;  %v2623_v12 = vadd.s32 128, %v2616_v43  ;;  %v1501_v51 = vmul.f32 32.0, %v1493_v32 }
 0x208   :  { %v2222_v9 = vpack.c.bf16 %v845_v4, %v837_v3  ;;  %v846_v11 = vmul.f32 %v2328_v5, %v2567_v15  ;;  %v2625_v15 = vshrl.u32 %v1346_v42, 7  ;;  %v1469_v22 = vcvt.s32.f32 %v2620_v10 }
 0x209   :  { %v2216_v13 = vpack.c.bf16 %v844_v7, %v836_v6  ;;  %v1468_v24 = vcvt.s32.f32 %v2623_v12  ;;  %v2720_v42 = vsub.f32 %v1467_v61, %v1501_v51 }
 0x20a   :  { %v2220_v16 = vpack.c.bf16 %v846_v11, %v838_v8  ;;  %v1348_v26 = vcvt.s32.f32 %v2625_v15  ;;  %v2649_v38 = vmul.f32 0.03125, %v1469_v22 }
 0x20b   :  { %2217 = vmatprep.subr.bf16.mxu0 %v2216_v13  ;;  %v2659_v45 = vmul.f32 0.03125, %v1468_v24 }
 0x20c   :  { %2221 = vmatprep.subr.bf16.mxu1 %v2220_v16  ;;  %2219 = vmatpush1.bf16.msra.mxu0 %v2218_v58  ;;  %v2663_v50 = vrot.slane %v1348_v26, 3  ;;  %v3230_v30 = vfloor.f32 %v2649_v38  ;;  %v3224_v16 = vcvt.s32.f32 %v2686_v56 }
 0x20d   :  { %2223 = vmatpush1.bf16.msra.mxu1 %v2222_v9  ;;  %v3229_v31 = vfloor.f32 %v2659_v45  ;;  %v3228_v9 = vfloor.f32 %v2674_v53 }
 0x20e   :  { %v1503_v36 = vmul.f32 32.0, %v3230_v30 }
 0x20f   :  { %2158 = vmatmul.mubr.msk.f32.vlgmr.msra.gmra.mrb[16].mxu0 %vm861_vm3, %v847_v18 }
 0x210   :  { %2160 = vmatmul.mubr.msk.f32.vlgmr.msra.gmra.mrb[16].mxu1 %vm861_vm3, %v847_v18  ;;  %1092 = vmatprep.mubr.f32.mxu0 %v3225_v2 }
 0x211   :  { %1169 = vmatprep.mubr.f32.mxu1 %v3225_v2 }
 0x213   :  { %2159 = vmatmul.mubr.msk.f32.gmra.mrb[18].mxu0 %vm861_vm3, %v848_v39 }
 0x214   :  { %2161 = vmatmul.mubr.msk.f32.gmra.mrb[18].mxu1 %vm861_vm3, %v848_v39 }
 0x2cd   :  { %v934_v29 = vpop.f32.mrb[12].mxu0 }
 0x2ce   :  { %v2645_v23 = vadd.f32 %v934_v29, %v2640_v28  ;;  %v1011_v37 = vpop.f32.mrb[12].mxu1  ;;  %v936_v40 = vpop.f32.mrb[13].mxu0 }
 0x2cf   :  { %v2652_v41 = vadd.f32 %v1011_v37, %v2640_v28  ;;  %v2655_v44 = vadd.f32 %v936_v40, %v2640_v28  ;;  %v1013_v46 = vpop.f32.mrb[13].mxu1 }
 0x2d0   :  { %v2162_v48 = vmul.f32 -1.442695, %v2645_v23  ;;  %v2666_v14 = vadd.f32 %v1013_v46, %v2640_v28  ;;  %v1225_v58 = vsel %vm1224_vm4, %v2645_v23, -inf  ;;  %v3222_v46 = vfloor.f32 %v2683_v55 }
 0x2d1   :  { %v2164_v27 = vmul.f32 -1.442695, %v2652_v41  ;;  %v2163_v52 = vmul.f32 -1.442695, %v2655_v44  ;;  %v940_v21 = vpop.f32.mrb[14].mxu0  ;;  %v1244_v49 = vsel %vm1224_vm4, %v2652_v41, -inf }
 0x2d2   :  { %2329 = vpow2.f32 %v2162_v48  ;;  %v2165_v18 = vmul.f32 -1.442695, %v2666_v14  ;;  %v1017_v34 = vpop.f32.mrb[14].mxu1  ;;  %v2689_v57 = vadd.f32 %v940_v21, %v2676_v54  ;;  %v942_v60 = vpop.f32.mrb[15].mxu0  ;;  %v1235_v3 = vsel %vm1224_vm4, %v2655_v44, -inf }
 0x2d3   :  { %2331 = vpow2.f32 %v2164_v27  ;;  %v2694_v59 = vadd.f32 %v1017_v34, %v2676_v54  ;;  %v1019_v39 = vpop.f32.mrb[15].mxu1  ;;  %v2699_v62 = vadd.f32 %v942_v60, %v2676_v54  ;;  %v1253_v4 = vsel %vm1224_vm4, %v2666_v14, -inf }
 0x2d4   :  { %2333 = vpow2.f32 %v2163_v52  ;;  %v2702_v63 = vadd.f32 %v1019_v39, %v2676_v54  ;;  %v1227_v0 = vsel %vm1226_vm5, %v2689_v57, -inf  ;;  %v2729_v48 = vsub.s32 %v1667_v17, %v2625_v15 }
 0x2d5   :  { %2335 = vpow2.f32 %v2165_v18  ;;  %v1245_v1 = vsel %vm1226_vm5, %v2694_v59, -inf  ;;  %v1228_v5 = vmax.f32 %v1225_v58, %v1227_v0  ;;  %v1236_v7 = vsel %vm1226_vm5, %v2699_v62, -inf }
 0x2d6   :  { %v1246_v6 = vmax.f32 %v1244_v49, %v1245_v1  ;;  %v1254_v8 = vsel %vm1226_vm5, %v2702_v63, -inf  ;;  %v1237_v11 = vmax.f32 %v1235_v3, %v1236_v7  ;;  %v1502_v27 = vmul.f32 32.0, %v3229_v31 }
 0x2d7   :  { %v1255_v13 = vmax.f32 %v1253_v4, %v1254_v8  ;;  %v1229_v26 = vrot.slane %v1228_v5, 4  ;;  %v1504_v18 = vmul.f32 32.0, %v3228_v9  ;;  %v2737_v58 = vmul.f32 0.03125, %v3224_v16 }
 0x2d8   :  { %v1247_v29 = vrot.slane %v1246_v6, 4  ;;  %v1238_v37 = vrot.slane %v1237_v11, 4  ;;  %v3223_v17 = vcvt.s32.f32 %v2723_v35  ;;  %v1505_v4 = vmul.f32 32.0, %v3222_v46 }
 0x2d9   :  { %v1256_v40 = vrot.slane %v1255_v13, 4  ;;  %v1230_v61 = vmax.f32 %v1228_v5, %v1229_v26  ;;  %3239 = vst [vmem:[#allocation5_spill] sm:$0xff] %v2737_v58  ;;  %v2743_v5 = vadd.s32 896, %v2616_v43  ;;  %v2751_v43 = vsub.f32 %v1468_v24, %v1502_v27 }
 0x2da   :  { %v1248_v51 = vmax.f32 %v1246_v6, %v1247_v29  ;;  %v1239_v21 = vmax.f32 %v1237_v11, %v1238_v37  ;;  %v2747_v37 = vsub.f32 %v1469_v22, %v1503_v36  ;;  %v3227_v22 = vfloor.f32 %v2737_v58 }
 0x2db   :  { %v1257_v34 = vmax.f32 %v1255_v13, %v1256_v40  ;;  %v1231_v49 = vrot.slane %v1230_v61, 2  ;;  %v2766_v12 = vmul.f32 0.03125, %v3223_v17  ;;  %v2770_v20 = vsub.f32 %v1471_v47, %v1505_v4 }
 0x2dc   :  { %v2330_v52 = vpop.eup %2329  ;;  %v1249_v15 = vrot.slane %v1248_v51, 2  ;;  %v1240_v3 = vrot.slane %v1239_v21, 2  ;;  %vm1573_vm13 = vcmp.gt.f32.partialorder %v2645_v23, -0.4054651  ;;  %vm1575_vm1 = vcmp.gt.f32.partialorder %v2652_v41, -0.4054651 }
 0x2dd   :  { %v2332_v60 = vpop.eup %2331  ;;  %v1200_v39 = vadd.f32 1.0, %v2330_v52  ;;  %v1232_v8 = vmax.f32 %v1230_v61, %v1231_v49  ;;  %v1258_v29 = vrot.slane %v1257_v34, 2  ;;  %v2755_v61 = vsub.f32 %v1470_v33, %v1504_v18  ;;  %3240 = vst [vmem:[#allocation6_spill] sm:$0xff] %v2770_v20 }
 0x2de   :  { %v2334_v0 = vpop.eup %2333  ;;  %v1202_v1 = vadd.f32 1.0, %v2332_v60  ;;  %v1250_v11 = vmax.f32 %v1248_v51, %v1249_v15  ;;  %v1241_v26 = vmax.f32 %v1239_v21, %v1240_v3  ;;  %vm1574_vm3 = vcmp.gt.f32.partialorder %v2655_v44, -0.4054651 }
 0x2df   :  { %v2336_v6 = vpop.eup %2335  ;;  %2337 = vrcp.f32 %v1200_v39  ;;  %v1201_v7 = vadd.f32 1.0, %v2334_v0  ;;  %v1233_v40 = vrot.slane %v1232_v8, 1  ;;  %v1259_v27 = vmax.f32 %v1257_v34, %v1258_v29 }
 0x2e0   :  { %2339 = vrcp.f32 %v1202_v1  ;;  %v1203_v13 = vadd.f32 1.0, %v2336_v6  ;;  %v1251_v52 = vrot.slane %v1250_v11, 1  ;;  %v1242_v51 = vrot.slane %v1241_v26, 1 }
 0x2e1   :  { %2341 = vrcp.f32 %v1201_v7  ;;  %v1234_v21 = vmax.f32 %v1232_v8, %v1233_v40 }
 0x2e2   :  { %2343 = vrcp.f32 %v1203_v13  ;;  %v2757_v60 = vpop.f32.mrb[16].mxu0  ;;  %v1252_v39 = vmax.f32 %v1250_v11, %v1251_v52  ;;  %v1243_v24 = vmax.f32 %v1241_v26, %v1242_v51  ;;  %v1260_v11 = vrot.slane %v1259_v27, 1 }
 0x2e3   :  { %v2759_v10 = vpop.f32.mrb[16].mxu1  ;;  %v2762_v36 = vpop.f32.mrb[17].mxu0  ;;  %v2170_v49 = vmul.f32 -1.442695, %v1234_v21  ;;  %vm1349_vm6 = vcmp.eq.f32.partialorder %v2645_v23, %v1234_v21  ;;  %vm1357_vm7 = vcmp.eq.f32.partialorder %v2689_v57, %v1234_v21 }
 0x2e4   :  { %v2772_v33 = vpop.f32.mrb[17].mxu1  ;;  %v2172_v15 = vmul.f32 -1.442695, %v1252_v39  ;;  %v1368_v0 = vsel %vm1349_vm6, %v2663_v50, 4.0  ;;  %v1376_v1 = vsel %vm1357_vm7, %v2663_v50, 4.0  ;;  %vm1351_vm8 = vcmp.eq.f32.partialorder %v2652_v41, %v1252_v39 }
 0x2e5   :  { %vm1359_vm9 = vcmp.eq.f32.partialorder %v2694_v59, %v1252_v39  ;;  %2345 = vpow2.f32 %v2170_v49  ;;  %v1384_v47 = vsel %vm1224_vm4, %v1368_v0, inf  ;;  %v1385_v34 = vsel %vm1226_vm5, %v1376_v1, inf }
 0x2e6   :  { %v2781_v25 = vpop.f32.mrb[18].mxu0  ;;  %v1370_v3 = vsel %vm1351_vm8, %v2663_v50, 4.0  ;;  %v1386_v6 = vmin.f32 %v1384_v47, %v1385_v34  ;;  %v1378_v7 = vsel %vm1359_vm9, %v2663_v50, 4.0  ;;  %v2171_v29 = vmul.f32 -1.442695, %v1243_v24 }
 0x2e7   :  { %v2786_v4 = vpop.f32.mrb[18].mxu1  ;;  %v2788_v57 = vpop.f32.mrb[19].mxu0  ;;  %v1402_v8 = vsel %vm1224_vm4, %v1370_v3, inf  ;;  %v1403_v26 = vsel %vm1226_vm5, %v1378_v7, inf  ;;  %vm1350_vm10 = vcmp.eq.f32.partialorder %v2655_v44, %v1243_v24  ;;  %vm1358_vm11 = vcmp.eq.f32.partialorder %v2699_v62, %v1243_v24 }
 0x2e8   :  { %v2792_v59 = vpop.f32.mrb[19].mxu1  ;;  %v1387_v51 = vrot.slane %v1386_v6, 4  ;;  %2347 = vpow2.f32 %v2172_v15  ;;  %v2802_v21 = vmin.f32 %v1402_v8, %v1403_v26  ;;  %v1369_v0 = vsel %vm1350_vm10, %v2663_v50, 4.0 }
 0x2e9   :  { %v2794_v13 = vpop.eup %2337  ;;  %v2810_v1 = vmul.f32 32.0, %v3227_v22  ;;  %2349 = vpow2.f32 %v2171_v29  ;;  %v2817_v17 = vmax.f32 %v1259_v27, %v1260_v11  ;;  %v1377_v22 = vsel %vm1358_vm11, %v2663_v50, 4.0 }
 0x2ea   :  { %v2799_v40 = vpop.eup %2339  ;;  %v1517_v52 = vmul.f32 2.0, %v2794_v13  ;;  %v1388_v46 = vmin.f32 %v1386_v6, %v1387_v51  ;;  %v2823_v47 = vsel %vm1224_vm4, %v1369_v0, inf  ;;  %v1405_v29 = vrot.slane %v2802_v21, 4 }
 0x2eb   :  { %v2804_v39 = vpop.eup %2341  ;;  %v1519_v49 = vmul.f32 2.0, %v2799_v40  ;;  %3241 = vst [vmem:[#allocation7_spill] sm:$0xff] %v2810_v1  ;;  %vm1352_vm12 = vcmp.eq.f32.partialorder %v2666_v14, %v2817_v17  ;;  %vm1360_vm14 = vcmp.eq.f32.partialorder %v2702_v63, %v2817_v17  ;;  %vm1576_vm9 = vcmp.gt.f32.partialorder %v2666_v14, -0.4054651 }
 0x2ec   :  { %v2813_v34 = vpop.eup %2343  ;;  %v2178_v3 = vadd.f32 -0.5, %v1517_v52  ;;  %v1549_v7 = vmul.f32 %v1517_v52, %v1517_v52  ;;  %v1518_v15 = vmul.f32 2.0, %v2804_v39  ;;  %v1389_v24 = vrot.slane %v1388_v46, 2 }
 0x2ed   :  { %v1551_v8 = vmul.f32 %v1519_v49, %v1519_v49  ;;  %v1520_v26 = vmul.f32 2.0, %v2813_v34  ;;  %v2180_v2 = vadd.f32 -0.5, %v1519_v49  ;;  %v1371_v63 = vsel %vm1352_vm12, %v2663_v50, 4.0 }
 0x2ee   :  { %v1557_v16 = vmul.f32 4.0, %v1549_v7  ;;  %v2179_v52 = vadd.f32 -0.5, %v1518_v15  ;;  %v1550_v9 = vmul.f32 %v1518_v15, %v1518_v15  ;;  %v1533_v31 = vadd.f32 %v2178_v3, %v2720_v42 }
 0x2ef   :  { %v1559_v18 = vmul.f32 4.0, %v1551_v8  ;;  %v1541_v27 = vadd.f32 %v2178_v3, %v1493_v32  ;;  %v2181_v11 = vadd.f32 -0.5, %v1520_v26  ;;  %v2346_v51 = vpop.eup %2345  ;;  %v1552_v62 = vmul.f32 %v1520_v26, %v1520_v26 }
 0x2f0   :  { %v1613_v6 = vmul.f32 0.5, %v1557_v16  ;;  %v1558_v7 = vmul.f32 4.0, %v1550_v9  ;;  %v1535_v0 = vadd.f32 %v2180_v2, %v2747_v37  ;;  %v3242_v8 = vfloor.f32 %v2649_v38 }
 0x2f1   :  { %v1615_v49 = vmul.f32 0.5, %v1559_v18  ;;  %v1322_v58 = vadd.f32 1.0, %v2346_v51  ;;  %v1534_v42 = vadd.f32 %v2179_v52, %v2751_v43  ;;  %v1560_v19 = vmul.f32 4.0, %v1552_v62 }
 0x2f2   :  { %v1629_v30 = vrot.slane %v1613_v6, 2  ;;  %v1543_v15 = vadd.f32 %v2180_v2, %v3242_v8  ;;  %v1614_v20 = vmul.f32 0.5, %v1558_v7  ;;  %v2348_v32 = vpop.eup %2347  ;;  %v3243_v16 = vfloor.f32 %v2659_v45 }
 0x2f3   :  { %v1631_v55 = vrot.slane %v1615_v49, 2  ;;  %v1536_v9 = vadd.f32 %v2181_v11, %v2755_v61  ;;  %v3244_v18 = vfloor.f32 %v2674_v53  ;;  %v2838_v6 = vmin.f32 %v1388_v46, %v1389_v24  ;;  %v2350_v49 = vpop.eup %2349 }
 0x2f4   :  { %v1542_v3 = vadd.f32 %v2179_v52, %v3243_v16  ;;  %v1645_v37 = vsub.f32 %v1533_v31, %v1629_v30  ;;  %v1713_v38 = vsub.f32 %v1541_v27, %v1629_v30  ;;  %v1782_v2 = vadd.f32 %v1629_v30, %v1533_v31 }
 0x2f5   :  { %v1544_v26 = vadd.f32 %v2181_v11, %v3244_v18  ;;  %v1851_v51 = vadd.f32 %v1629_v30, %v1541_v27  ;;  %v1647_v8 = vsub.f32 %v1535_v0, %v1631_v55  ;;  %v1630_v43 = vrot.slane %v1614_v20, 2 }
 0x2f6   :  { %v1616_v7 = vmul.f32 0.5, %v1560_v19  ;;  %2351 = vrcp.f32 %v1322_v58  ;;  %v1715_v62 = vsub.f32 %v1543_v15, %v1631_v55  ;;  %v1784_v35 = vadd.f32 %v1631_v55, %v1535_v0 }
 0x2f7   :  { %v1853_v45 = vadd.f32 %v1631_v55, %v1543_v15  ;;  %v1324_v52 = vadd.f32 1.0, %v2348_v32  ;;  %v1646_v16 = vsub.f32 %v1534_v42, %v1630_v43  ;;  %v1714_v61 = vsub.f32 %v1542_v3, %v1630_v43 }
 0x2f8   :  { %v1783_v56 = vadd.f32 %v1630_v43, %v1534_v42  ;;  %v1852_v53 = vadd.f32 %v1630_v43, %v1542_v3  ;;  %v1632_v11 = vrot.slane %v1616_v7, 2  ;;  %v1323_v46 = vadd.f32 1.0, %v2350_v49 }
 0x2f9   :  { %2353 = vrcp.f32 %v1324_v52  ;;  %v1394_v24 = vsel %vm1226_vm5, %v1377_v22, inf  ;;  %v1661_v31 = vcombine.low %v1645_v37, %v1646_v16  ;;  %v1729_v30 = vcombine.low %v1713_v38, %v1714_v61 }
 0x2fa   :  { %v1798_v27 = vcombine.low %v1782_v2, %v1783_v56  ;;  %v1867_v18 = vcombine.low %v1851_v51, %v1852_v53  ;;  %v1648_v20 = vsub.f32 %v1536_v9, %v1632_v11  ;;  %v1716_v19 = vsub.f32 %v1544_v26, %v1632_v11 }
 0x2fb   :  { %v1785_v58 = vadd.f32 %v1632_v11, %v1536_v9  ;;  %v1854_v1 = vadd.f32 %v1632_v11, %v1544_v26  ;;  %v1671_v55 = vrot.slane %v1661_v31, %v2729_v48  ;;  %v1739_v0 = vrot.slane %v1729_v30, %v2729_v48 }
 0x2fc   :  { %v2844_v15 = vrot.slane %v1798_v27, %v2729_v48  ;;  %v2847_v42 = vrot.slane %v1867_v18, %v2729_v48  ;;  %v1662_v32 = vcombine.low %v1647_v8, %v1648_v20  ;;  %v1730_v22 = vcombine.low %v1715_v62, %v1716_v19 }
 0x2fd   :  { %v1799_v3 = vcombine.low %v1784_v35, %v1785_v58  ;;  %v1868_v37 = vcombine.low %v1853_v45, %v1854_v1  ;;  %v1406_v56 = vmin.f32 %v2802_v21, %v1405_v29  ;;  %2355 = vrcp.f32 %v1323_v46 }
 0x2fe   :  { %v1395_v9 = vmin.f32 %v2823_v47, %v1394_v24  ;;  %v2173_v26 = vmul.f32 -1.442695, %v2817_v17  ;;  %v1678_v38 = vrot.slane %v1662_v32, %v2729_v48  ;;  %v1746_v2 = vrot.slane %v1730_v22, %v2729_v48 }
 0x2ff   :  { %v2855_v51 = vrot.slane %v1799_v3, %v2729_v48  ;;  %v2858_v49 = vrot.slane %v1868_v37, %v2729_v48  ;;  %v2864_v21 = vadd.f32 %v2757_v60, %v2640_v28  ;;  %v1391_v45 = vrot.slane %v2838_v6, 1 }
 0x300   :  { %v2352_v8 = vpop.eup %2351  ;;  %v1396_v35 = vrot.slane %v1395_v9, 4  ;;  %2357 = vpow2.f32 %v2173_v26  ;;  %v2866_v1 = vcombine.low %v1671_v55, %v1678_v38  ;;  %v2868_v47 = vcombine.high %v1739_v0, %v1746_v2 }
 0x301   :  { %v1830_v29 = vcombine.low %v2844_v15, %v2855_v51  ;;  %v1899_v43 = vcombine.high %v2847_v42, %v2858_v49  ;;  %v2876_v7 = vmul.f32 %v2352_v8, %v2794_v13  ;;  %v1407_v52 = vrot.slane %v1406_v56, 2 }
 0x302   :  { %v1397_v62 = vmin.f32 %v1395_v9, %v1396_v35  ;;  %v2883_v16 = vadd.f32 %v2759_v10, %v2640_v28  ;;  %v2887_v61 = vadd.f32 %v2762_v36, %v2640_v28  ;;  %v1379_v10 = vsel %vm1360_vm14, %v2663_v50, 4.0 }
 0x303   :  { %v2354_v60 = vpop.eup %2353  ;;  %vm1581_vm15 = vcmp.gt.f32.partialorder %v2876_v7, 0.4  ;;  %v1411_v36 = vsel %vm1224_vm4, %v1371_v63, inf  ;;  %v2166_v11 = vmul.f32 -1.442695, %v2864_v21  ;;  %v3247_v46 = vcvt.s32.f32 %v2743_v5 }
 0x304   :  { %v2891_v23 = vmul.f32 %v2354_v60, %v2799_v40  ;;  %v1398_v13 = vrot.slane %v1397_v62, 2  ;;  %vm2897_vm0 = vmand %vm1573_vm13, %vm1581_vm15  ;;  %v1412_v24 = vsel %vm1226_vm5, %v1379_v10, inf  ;;  %v2168_v27 = vmul.f32 -1.442695, %v2883_v16 }
 0x305   :  { %v2906_v40 = vmul.f32 0.03125, %v3247_v46  ;;  %v1413_v30 = vmin.f32 %v1411_v36, %v1412_v24  ;;  %2359 = vpow2.f32 %v2166_v11  ;;  %v1392_v20 = vmin.f32 %v2838_v6, %v1391_v45 }
 0x306   :  { %vm1583_vm2 = vcmp.gt.f32.partialorder %v2891_v23, 0.4  ;;  %v1399_v17 = vmin.f32 %v1397_v62, %v1398_v13  ;;  %v1408_v19 = vmin.f32 %v1406_v56, %v1407_v52  ;;  %v2167_v58 = vmul.f32 -1.442695, %v2887_v61 }
 0x307   :  { %vm2912_vm6 = vmand %vm1575_vm1, %vm1583_vm2  ;;  %v2356_v18 = vpop.eup %2355  ;;  %v1414_v0 = vrot.slane %v1413_v30, 4  ;;  %2361 = vpow2.f32 %v2168_v27  ;;  %v2924_v32 = vadd.f32 %v2772_v33, %v2640_v28  ;;  %v3250_v3 = vmov 0.0  }
 0x308   :  { %v1400_v41 = vrot.slane %v1399_v17, 1  ;;  %v2920_v55 = vmul.f32 %v2356_v18, %v2804_v39  ;;  %v2929_v37 = vsel %vm2897_vm0, 1.0, %v3250_v3  ;;  %2363 = vpow2.f32 %v2167_v58 }
 0x309   :  { %v2933_v56 = vadd.f32 %v2781_v25, %v2676_v54  ;;  %v1415_v28 = vmin.f32 %v1413_v30, %v1414_v0  ;;  %v1409_v33 = vrot.slane %v1408_v19, 1  ;;  %v2169_v38 = vmul.f32 -1.442695, %v2924_v32 }
 0x30a   :  { %v2358_v22 = vpop.eup %2357  ;;  %v1401_v6 = vmin.f32 %v1399_v17, %v1400_v41  ;;  %vm1582_vm7 = vcmp.gt.f32.partialorder %v2920_v55, 0.4  ;;  %v1928_v39 = vcombine.high %v2876_v7, %v2920_v55  ;;  %v1262_v35 = vsel %vm1224_vm4, %v2864_v21, -inf }
 0x30b   :  { %v1325_v9 = vadd.f32 1.0, %v2358_v22  ;;  %vm1590_vm8 = vmand %vm1574_vm3, %vm1582_vm7  ;;  %v1263_v2 = vsel %vm1226_vm5, %v2933_v56, -inf  ;;  %v1416_v8 = vrot.slane %v1415_v28, 2  ;;  %v3251_v62 = vfloor.f32 %v2766_v12 }
 0x30c   :  { %v1989_v26 = vcombine.low %v1392_v20, %v1401_v6  ;;  %v2187_v25 = vsel %vm1590_vm8, 1.0, %v3250_v3  ;;  %v1264_v44 = vmax.f32 %v1262_v35, %v1263_v2  ;;  %v3235_v52 = vfloor.f32 %v2906_v40 }
 0x30d   :  { %2365 = vrcp.f32 %v1325_v9  ;;  %v2050_v7 = vcombine.high %v2929_v37, %v2187_v25  ;;  %v2949_v60 = vmul.f32 32.0, %v3251_v62  ;;  %v1417_v45 = vmin.f32 %v1415_v28, %v1416_v8 }
 0x30e   :  { %2367 = vpow2.f32 %v2169_v38  ;;  %v2954_v13 = vadd.f32 %v2786_v4, %v2676_v54  ;;  %v2958_v63 = vadd.f32 %v2788_v57, %v2676_v54  ;;  %v1410_v53 = vmin.f32 %v1408_v19, %v1409_v33 }
 0x30f   :  { %v1265_v10 = vrot.slane %v1264_v44, 4  ;;  %v1280_v36 = vsel %vm1224_vm4, %v2883_v16, -inf  ;;  %v2964_v11 = vadd.f32 %v2792_v59, %v2676_v54  ;;  %v2360_v46 = vpop.eup %2359  ;;  %v1418_v17 = vrot.slane %v1417_v45, 1 }
 0x310   :  { %v1281_v24 = vsel %vm1226_vm5, %v2954_v13, -inf  ;;  %v1271_v4 = vsel %vm1224_vm4, %v2887_v61, -inf  ;;  %v1272_v57 = vsel %vm1226_vm5, %v2958_v63, -inf  ;;  %v1204_v30 = vadd.f32 1.0, %v2360_v46 }
 0x311   :  { %v1266_v27 = vmax.f32 %v1264_v44, %v1265_v10  ;;  %v1282_v18 = vmax.f32 %v1280_v36, %v1281_v24  ;;  %v1273_v20 = vmax.f32 %v1271_v4, %v1272_v57  ;;  %v2362_v19 = vpop.eup %2361  ;;  %v2973_v41 = vrot.slane %v1989_v26, %v2729_v48 }
 0x312   :  { %v1419_v54 = vmin.f32 %v1417_v45, %v1418_v17  ;;  %v1289_v59 = vsel %vm1224_vm4, %v2924_v32, -inf  ;;  %v1290_v58 = vsel %vm1226_vm5, %v2964_v11, -inf  ;;  %v2364_v55 = vpop.eup %2363  ;;  %2369 = vrcp.f32 %v1204_v30 }
 0x313   :  { %v1206_v0 = vadd.f32 1.0, %v2362_v19  ;;  %v1267_v22 = vrot.slane %v1266_v27, 2  ;;  %v1283_v37 = vrot.slane %v1282_v18, 4  ;;  %v1205_v9 = vadd.f32 1.0, %v2364_v55 }
 0x314   :  { %v1990_v6 = vcombine.low %v1410_v53, %v1419_v54  ;;  %v1274_v28 = vrot.slane %v1273_v20, 4  ;;  %v1291_v33 = vmax.f32 %v1289_v59, %v1290_v58  ;;  %v1508_v26 = vmul.f32 32.0, %v3235_v52 }
 0x315   :  { %2371 = vrcp.f32 %v1206_v0  ;;  %v1268_v38 = vmax.f32 %v1266_v27, %v1267_v22  ;;  %v1284_v2 = vmax.f32 %v1282_v18, %v1283_v37  ;;  %v2188_v36 = vsel %vm2912_vm6, 1.0, %v3250_v3 }
 0x316   :  { %v2982_v8 = vrot.slane %v1990_v6, %v2729_v48  ;;  %2373 = vrcp.f32 %v1205_v9  ;;  %v1275_v35 = vmax.f32 %v1273_v20, %v1274_v28  ;;  %v1292_v62 = vrot.slane %v1291_v33, 4  ;;  %v3252_v6 = vld [vmem:[#allocation7_spill] sm:$0xff] }
 0x317   :  { %v2366_v25 = vpop.eup %2365  ;;  %v1269_v53 = vrot.slane %v1268_v38, 1  ;;  %v1285_v10 = vrot.slane %v1284_v2, 2  ;;  %v2990_v46 = vrot.slane %v1928_v39, %v2729_v48  ;;  %v3253_v9 = vld [vmem:[#allocation3_spill] sm:$0xff]  ;;  %vm1577_vm0 = vcmp.gt.f32.partialorder %v2864_v21, -0.4054651 }
 0x318   :  { %v2368_v44 = vpop.eup %2367  ;;  %v1568_v45 = vmul.f32 %v2366_v25, %v2813_v34  ;;  %v2996_v34 = vrot.slane %v2050_v7, %v2729_v48  ;;  %v1276_v30 = vrot.slane %v1275_v35, 2  ;;  %v1293_v31 = vmax.f32 %v1291_v33, %v1292_v62 }
 0x319   :  { %v1207_v24 = vadd.f32 1.0, %v2368_v44  ;;  %v1270_v57 = vmax.f32 %v1268_v38, %v1269_v53  ;;  %v1286_v14 = vmax.f32 %v1284_v2, %v1285_v10  ;;  %v3254_v28 = vcvt.s32.f32 %v3253_v9  ;;  %v3255_v38 = vld [vmem:[#allocation4_spill] sm:$0xff] }
 0x31a   :  { %vm1584_vm10 = vcmp.gt.f32.partialorder %v1568_v45, 0.4  ;;  %v1929_v4 = vcombine.high %v2891_v23, %v1568_v45  ;;  %v3256_v2 = vcvt.s32.f32 %v3255_v38  ;;  %v3257_v62 = vcvt.s32.f32 %v2743_v5 }
 0x31b   :  { %vm1592_vm11 = vmand %vm1576_vm9, %vm1584_vm10  ;;  %2375 = vrcp.f32 %v1207_v24  ;;  %v2174_v18 = vmul.f32 -1.442695, %v1270_v57  ;;  %vm1353_vm12 = vcmp.eq.f32.partialorder %v2864_v21, %v1270_v57  ;;  %vm1361_vm13 = vcmp.eq.f32.partialorder %v2933_v56, %v1270_v57 }
 0x31c   :  { %v2189_v27 = vsel %vm1592_vm11, 1.0, %v3250_v3  ;;  %v3000_v39 = vrot.slane %v1929_v4, %v2729_v48  ;;  %v1372_v23 = vsel %vm1353_vm12, %v2663_v50, 4.0  ;;  %v1287_v19 = vrot.slane %v1286_v14, 1  ;;  %v3005_v7 = vpop.eup %2369 }
 0x31d   :  { %v2051_v20 = vcombine.high %v2188_v36, %v2189_v27  ;;  %2377 = vpow2.f32 %v2174_v18  ;;  %v1380_v59 = vsel %vm1361_vm13, %v2663_v50, 4.0  ;;  %v1420_v58 = vsel %vm1224_vm4, %v1372_v23, inf }
 0x31e   :  { %v1521_v0 = vmul.f32 2.0, %v3005_v7  ;;  %v1421_v56 = vsel %vm1226_vm5, %v1380_v59, inf  ;;  %v1288_v22 = vmax.f32 %v1286_v14, %v1287_v19  ;;  %v1515_v33 = vsub.f32 %v3254_v28, %v3252_v6 }
 0x31f   :  { %v3012_v55 = vrot.slane %v2051_v20, %v2729_v48  ;;  %v3016_v37 = vpop.eup %2371  ;;  %v1514_v25 = vsub.f32 %v3256_v2, %v2949_v60  ;;  %v3026_v44 = vsub.f32 %v3257_v62, %v1508_v26  ;;  %v3028_v45 = vmin.f32 %v1420_v58, %v1421_v56  ;;  %v3258_v2 = vld [vmem:[#allocation6_spill] sm:$0xff] }
 0x320   :  { %v3030_v53 = vpop.eup %2373  ;;  %v1553_v36 = vmul.f32 %v1521_v0, %v1521_v0  ;;  %v1523_v24 = vmul.f32 2.0, %v3016_v37  ;;  %v1277_v4 = vmax.f32 %v1275_v35, %v1276_v30  ;;  %v2176_v14 = vmul.f32 -1.442695, %v1288_v22 }
 0x321   :  { %v1522_v57 = vmul.f32 2.0, %v3030_v53  ;;  %vm1355_vm14 = vcmp.eq.f32.partialorder %v2883_v16, %v1288_v22  ;;  %v1294_v60 = vrot.slane %v1293_v31, 2  ;;  %v3045_v27 = vrot.slane %v1830_v29, %v2729_v48 }
 0x322   :  { %v1561_v18 = vmul.f32 4.0, %v1553_v36  ;;  %v2182_v35 = vadd.f32 -0.5, %v1521_v0  ;;  %v2184_v30 = vadd.f32 -0.5, %v1523_v24  ;;  %v1555_v20 = vmul.f32 %v1523_v24, %v1523_v24 }
 0x323   :  { %v1554_v23 = vmul.f32 %v1522_v57, %v1522_v57  ;;  %v2183_v58 = vadd.f32 -0.5, %v1522_v57  ;;  %2379 = vpow2.f32 %v2176_v14  ;;  %vm1363_vm15 = vcmp.eq.f32.partialorder %v2954_v13, %v1288_v22  ;;  %v3261_v57 = vld [vmem:[#allocation5_spill] sm:$0xff] }
 0x324   :  { %v1617_v59 = vmul.f32 0.5, %v1561_v18  ;;  %v3054_v56 = vrot.slane %v1899_v43, %v2729_v48  ;;  %v1563_v15 = vmul.f32 4.0, %v1555_v20  ;;  %v1278_v51 = vrot.slane %v1277_v4, 1  ;;  %v3259_v43 = vld [vmem:[#allocation2_spill] sm:$0xff] }
 0x325   :  { %v3047_v19 = vpop.eup %2375  ;;  %v3056_v29 = vmax.f32 %v1293_v31, %v1294_v60  ;;  %v1562_v6 = vmul.f32 4.0, %v1554_v23  ;;  %v1423_v28 = vrot.slane %v3028_v45, 4  ;;  %v1537_v62 = vadd.f32 %v2182_v35, %v3258_v2 }
 0x326   :  { %v1633_v0 = vrot.slane %v1617_v59, 2  ;;  %v1524_v9 = vmul.f32 2.0, %v3047_v19  ;;  %v1619_v13 = vmul.f32 0.5, %v1563_v15  ;;  %v1374_v42 = vsel %vm1355_vm14, %v2663_v50, 4.0 }
 0x327   :  { %v2378_v38 = vpop.eup %2377  ;;  %v1382_v49 = vsel %vm1363_vm15, %v2663_v50, 4.0  ;;  %v3260_v36 = vfloor.f32 %v3259_v43  ;;  %v1539_v24 = vadd.f32 %v2184_v30, %v1515_v33  ;;  %v3262_v14 = vfloor.f32 %v3261_v57 }
 0x328   :  { %v1538_v18 = vadd.f32 %v2183_v58, %v1514_v25  ;;  %v1635_v20 = vrot.slane %v1619_v13, 2  ;;  %v3263_v23 = vfloor.f32 %v2766_v12  ;;  %v1618_v2 = vmul.f32 0.5, %v1562_v6 }
 0x329   :  { %v1545_v31 = vadd.f32 %v2182_v35, %v3260_v36  ;;  %v1547_v60 = vadd.f32 %v2184_v30, %v3262_v14  ;;  %v1556_v15 = vmul.f32 %v1524_v9, %v1524_v9  ;;  %v1649_v10 = vsub.f32 %v1537_v62, %v1633_v0 }
 0x32a   :  { %v1546_v59 = vadd.f32 %v2183_v58, %v3263_v23  ;;  %v1326_v54 = vadd.f32 1.0, %v2378_v38  ;;  %v1438_v22 = vsel %vm1224_vm4, %v1374_v42, inf  ;;  %v1439_v17 = vsel %vm1226_vm5, %v1382_v49, inf }
 0x32b   :  { %v1717_v26 = vsub.f32 %v1545_v31, %v1633_v0  ;;  %v1786_v43 = vadd.f32 %v1633_v0, %v1537_v62  ;;  %v1855_v35 = vadd.f32 %v1633_v0, %v1545_v31  ;;  %v2185_v33 = vadd.f32 -0.5, %v1524_v9 }
 0x32c   :  { %v1651_v36 = vsub.f32 %v1539_v24, %v1635_v20  ;;  %v1719_v57 = vsub.f32 %v1547_v60, %v1635_v20  ;;  %v1634_v30 = vrot.slane %v1618_v2, 2  ;;  %v1564_v25 = vmul.f32 4.0, %v1556_v15 }
 0x32d   :  { %v1788_v13 = vadd.f32 %v1635_v20, %v1539_v24  ;;  %2381 = vrcp.f32 %v1326_v54  ;;  %v3073_v12 = vmin.f32 %v1438_v22, %v1439_v17  ;;  %v1279_v58 = vmax.f32 %v1277_v4, %v1278_v51  ;;  %v2380_v6 = vpop.eup %2379 }
 0x32e   :  { %v1650_v14 = vsub.f32 %v1538_v18, %v1634_v30  ;;  %v1718_v38 = vsub.f32 %v1546_v59, %v1634_v30  ;;  %v1787_v23 = vadd.f32 %v1634_v30, %v1538_v18  ;;  %v1856_v42 = vadd.f32 %v1634_v30, %v1546_v59 }
 0x32f   :  { %v1857_v5 = vadd.f32 %v1635_v20, %v1547_v60  ;;  %v1540_v49 = vadd.f32 %v2185_v33, %v3026_v44  ;;  %v1620_v62 = vmul.f32 0.5, %v1564_v25  ;;  %v1328_v0 = vadd.f32 1.0, %v2380_v6 }
 0x330   :  { %v1663_v9 = vcombine.low %v1649_v10, %v1650_v14  ;;  %v1731_v31 = vcombine.low %v1717_v26, %v1718_v38  ;;  %v1800_v52 = vcombine.low %v1786_v43, %v1787_v23  ;;  %v1869_v2 = vcombine.low %v1855_v35, %v1856_v42 }
 0x331   :  { %v3264_v24 = vfloor.f32 %v2906_v40  ;;  %v1636_v17 = vrot.slane %v1620_v62, 2  ;;  %2383 = vrcp.f32 %v1328_v0  ;;  %v2175_v4 = vmul.f32 -1.442695, %v1279_v58 }
 0x332   :  { %v1685_v51 = vrot.slane %v1663_v9, %v2729_v48  ;;  %v1753_v60 = vrot.slane %v1731_v31, %v2729_v48  ;;  %v1822_v44 = vrot.slane %v1800_v52, %v2729_v48  ;;  %v1424_v18 = vmin.f32 %v3028_v45, %v1423_v28 }
 0x333   :  { %v1548_v54 = vadd.f32 %v2185_v33, %v3264_v24  ;;  %v1652_v10 = vsub.f32 %v1540_v49, %v1636_v17  ;;  %v1789_v20 = vadd.f32 %v1636_v17, %v1540_v49  ;;  %v1891_v40 = vrot.slane %v1869_v2, %v2729_v48 }
 0x334   :  { %2385 = vpow2.f32 %v2175_v4  ;;  %vm1354_vm1 = vcmp.eq.f32.partialorder %v2887_v61, %v1279_v58  ;;  %vm1362_vm2 = vcmp.eq.f32.partialorder %v2958_v63, %v1279_v58  ;;  %vm1579_vm3 = vcmp.gt.f32.partialorder %v2883_v16, -0.4054651 }
 0x335   :  { %v1720_v26 = vsub.f32 %v1548_v54, %v1636_v17  ;;  %v1858_v59 = vadd.f32 %v1636_v17, %v1548_v54  ;;  %v1664_v15 = vcombine.low %v1651_v36, %v1652_v10  ;;  %v1801_v43 = vcombine.low %v1788_v13, %v1789_v20 }
 0x336   :  { %v1425_v52 = vrot.slane %v1424_v18, 2  ;;  %v1373_v45 = vsel %vm1354_vm1, %v2663_v50, 4.0  ;;  %v1381_v28 = vsel %vm1362_vm2, %v2663_v50, 4.0  ;;  %v1296_v33 = vrot.slane %v3056_v29, 1 }
 0x337   :  { %v1732_v22 = vcombine.low %v1719_v57, %v1720_v26  ;;  %v1870_v35 = vcombine.low %v1857_v5, %v1858_v59  ;;  %v2382_v30 = vpop.eup %2381  ;;  %v1692_v25 = vrot.slane %v1664_v15, %v2729_v48  ;;  %v1829_v63 = vrot.slane %v1801_v43, %v2729_v48 }
 0x338   :  { %v3095_v5 = vmul.f32 %v2382_v30, %v3005_v7  ;;  %v1441_v57 = vrot.slane %v3073_v12, 4  ;;  %v1429_v13 = vsel %vm1224_vm4, %v1373_v45, inf  ;;  %v1430_v58 = vsel %vm1226_vm5, %v1381_v28, inf }
 0x339   :  { %v1760_v6 = vrot.slane %v1732_v22, %v2729_v48  ;;  %v1898_v36 = vrot.slane %v1870_v35, %v2729_v48  ;;  %v1694_v14 = vcombine.low %v1685_v51, %v1692_v25  ;;  %v1831_v23 = vcombine.low %v1822_v44, %v1829_v63 }
 0x33a   :  { %v1426_v49 = vmin.f32 %v1424_v18, %v1425_v52  ;;  %vm1585_vm6 = vcmp.gt.f32.partialorder %v3095_v5, 0.4  ;;  %v1431_v62 = vmin.f32 %v1429_v13, %v1430_v58  ;;  %v1297_v0 = vmax.f32 %v3056_v29, %v1296_v33 }
 0x33b   :  { %v1762_v38 = vcombine.high %v1753_v60, %v1760_v6  ;;  %v1900_v42 = vcombine.high %v1891_v40, %v1898_v36  ;;  %v2384_v9 = vpop.eup %2383  ;;  %v1708_v7 = vrot.slane %v1694_v14, %v2729_v48  ;;  %v1845_v2 = vrot.slane %v1831_v23, %v2729_v48  ;;  %vm3108_vm7 = vmand %vm1577_vm0, %vm1585_vm6 }
 0x33c   :  { %v1442_v17 = vmin.f32 %v3073_v12, %v1441_v57  ;;  %v3114_v4 = vmul.f32 %v2384_v9, %v3016_v37  ;;  %v1432_v29 = vrot.slane %v1431_v62, 4  ;;  %v2177_v51 = vmul.f32 -1.442695, %v1297_v0 }
 0x33d   :  { %v1776_v31 = vrot.slane %v1762_v38, %v2729_v48  ;;  %v1914_v24 = vrot.slane %v1900_v42, %v2729_v48  ;;  %v3267_v60 = vrot.slane %v2866_v1, %v2729_v48  ;;  %v3268_v18 = vrot.slane %v2868_v47, %v2729_v48 }
 0x33e   :  { %v1846_v21 = vcombine.low %v3045_v27, %v1845_v2  ;;  %v2386_v20 = vpop.eup %2385  ;;  %vm1587_vm8 = vcmp.gt.f32.partialorder %v3114_v4, 0.4  ;;  %v1433_v12 = vmin.f32 %v1431_v62, %v1432_v29  ;;  %2387 = vpow2.f32 %v2177_v51 }
 0x33f   :  { %v1709_v44 = vcombine.low %v3267_v60, %v1708_v7  ;;  %v1777_v10 = vcombine.low %v3268_v18, %v1776_v31  ;;  %v1915_v26 = vcombine.low %v3054_v56, %v1914_v24  ;;  %vm1356_vm9 = vcmp.eq.f32.partialorder %v2924_v32, %v1297_v0  ;;  %vm3152_vm10 = vmand %vm1579_vm3, %vm1587_vm8 }
 0x340   :  { %2196 = vst [vmem:[%s3221_s7 + $0x2] ss:$8 sm:$0xf] %v1846_v21  ;;  %2197 = vst [vmem:[%s3221_s7 + $0x2] ss:$8 sm:$0xf0] %v1846_v21  ;;  %vm1364_vm11 = vcmp.eq.f32.partialorder %v2964_v11, %v1297_v0 }
 0x341   :  { %1711 = vst [vmem:[%s3221_s7] ss:$8 sm:$0xf] %v1709_v44  ;;  %1712 = vst [vmem:[%s3221_s7] ss:$8 sm:$0xf0] %v1709_v44  ;;  %v1427_v1 = vrot.slane %v1426_v49, 1  ;;  %v1327_v37 = vadd.f32 1.0, %v2386_v20 }
 0x342   :  { %2194 = vst [vmem:[%s3221_s7 + $0x1] ss:$8 sm:$0xf] %v1777_v10  ;;  %2195 = vst [vmem:[%s3221_s7 + $0x1] ss:$8 sm:$0xf0] %v1777_v10 }
 0x343   :  { %2198 = vst [vmem:[%s3221_s7 + $0x3] ss:$8 sm:$0xf] %v1915_v26  ;;  %2199 = vst [vmem:[%s3221_s7 + $0x3] ss:$8 sm:$0xf0] %v1915_v26  ;;  %2389 = vrcp.f32 %v1327_v37  ;;  %v1428_v35 = vmin.f32 %v1426_v49, %v1427_v1  ;;  %v3273_v26 = vcombine.low %v2996_v34, %v3012_v55 }
 0x344   :  { %v1375_v27 = vsel %vm1356_vm9, %v2663_v50, 4.0  ;;  %v1443_v56 = vrot.slane %v1442_v17, 2  ;;  %v1434_v59 = vrot.slane %v1433_v12, 2  ;;  %v1383_v40 = vsel %vm1364_vm11, %v2663_v50, 4.0 }
 0x345   :  { %v1447_v15 = vsel %vm1224_vm4, %v1375_v27, inf  ;;  %v1448_v22 = vsel %vm1226_vm5, %v1383_v40, inf  ;;  %vm1578_vm4 = vcmp.gt.f32.partialorder %v2887_v61, -0.4054651  ;;  %v2190_v38 = vsel %vm3108_vm7, 1.0, %v3250_v3 }
 0x346   :  { %v1435_v43 = vmin.f32 %v1433_v12, %v1434_v59  ;;  %v1449_v16 = vmin.f32 %v1447_v15, %v1448_v22  ;;  %v1444_v52 = vmin.f32 %v1442_v17, %v1443_v56  ;;  %v3271_v61 = vcombine.low %v2973_v41, %v2982_v8 }
 0x347   :  { %vm1580_vm13 = vcmp.gt.f32.partialorder %v2924_v32, -0.4054651  ;;  %v2192_v54 = vsel %vm3152_vm10, 1.0, %v3250_v3  ;;  %v2090_v20 = vrot.slane %v3273_v26, %v2729_v48 }
 0x348   :  { %v1436_v45 = vrot.slane %v1435_v43, 1  ;;  %v1450_v28 = vrot.slane %v1449_v16, 4  ;;  %v2388_v11 = vpop.eup %2387  ;;  %v1445_v25 = vrot.slane %v1444_v52, 1  ;;  %v2029_v2 = vrot.slane %v3271_v61, %v2729_v48 }
 0x349   :  { %v1329_v36 = vadd.f32 1.0, %v2388_v11 }
 0x34a   :  { %v1437_v33 = vmin.f32 %v1435_v43, %v1436_v45  ;;  %v1451_v30 = vmin.f32 %v1449_v16, %v1450_v28  ;;  %v1446_v13 = vmin.f32 %v1444_v52, %v1445_v25 }
 0x34b   :  { %2391 = vrcp.f32 %v1329_v36 }
 0x34c   :  { %v1991_v6 = vcombine.low %v1428_v35, %v1437_v33  ;;  %v1452_v63 = vrot.slane %v1451_v30, 2 }
 0x34d   :  { %v2390_v50 = vpop.eup %2389 }
 0x34e   :  { %v1453_v57 = vmin.f32 %v1451_v30, %v1452_v63  ;;  %v1570_v58 = vmul.f32 %v2390_v50, %v3030_v53  ;;  %v2013_v62 = vrot.slane %v1991_v6, %v2729_v48 }
 0x350   :  { %v1454_v14 = vrot.slane %v1453_v57, 1  ;;  %vm1586_vm5 = vcmp.gt.f32.partialorder %v1570_v58, 0.4  ;;  %v1930_v23 = vcombine.high %v3095_v5, %v1570_v58 }
 0x351   :  { %vm1594_vm12 = vmand %vm1578_vm4, %vm1586_vm5 }
 0x352   :  { %v1455_v42 = vmin.f32 %v1453_v57, %v1454_v14  ;;  %v2191_v49 = vsel %vm1594_vm12, 1.0, %v3250_v3  ;;  %v1952_v17 = vrot.slane %v1930_v23, %v2729_v48 }
 0x353   :  { %v2052_v9 = vcombine.high %v2190_v38, %v2191_v49 }
 0x354   :  { %v1992_v0 = vcombine.low %v1446_v13, %v1455_v42 }
 0x355   :  { %v2392_v31 = vpop.eup %2391  ;;  %v2074_v32 = vrot.slane %v2052_v9, %v2729_v48 }
 0x356   :  { %v2020_v53 = vrot.slane %v1992_v0, %v2729_v48  ;;  %v1572_v24 = vmul.f32 %v2392_v31, %v3047_v19 }
 0x358   :  { %v2022_v7 = vcombine.low %v2013_v62, %v2020_v53  ;;  %vm1588_vm14 = vcmp.gt.f32.partialorder %v1572_v24, 0.4  ;;  %v1931_v29 = vcombine.high %v3114_v4, %v1572_v24 }
 0x359   :  { %vm1596_vm15 = vmand %vm1580_vm13, %vm1588_vm14 }
 0x35a   :  { %v2036_v5 = vrot.slane %v2022_v7, %v2729_v48  ;;  %v2193_v41 = vsel %vm1596_vm15, 1.0, %v3250_v3  ;;  %v1959_v8 = vrot.slane %v1931_v29, %v2729_v48  ;;  %v3272_v3 = vcombine.low %v2990_v46, %v3000_v39 }
 0x35b   :  { %v2053_v19 = vcombine.high %v2192_v54, %v2193_v41 }
 0x35c   :  { %v2037_v51 = vcombine.low %v2029_v2, %v2036_v5  ;;  %v1961_v60 = vcombine.low %v1952_v17, %v1959_v8  ;;  %v1968_v44 = vrot.slane %v3272_v3, %v2729_v48 }
 0x35d   :  { %v2081_v4 = vrot.slane %v2053_v19, %v2729_v48 }
 0x35e   :  { %2202 = vst [vmem:[%s3221_s7 + $0x5] ss:$8 sm:$0xf] %v2037_v51  ;;  %2203 = vst [vmem:[%s3221_s7 + $0x5] ss:$8 sm:$0xf0] %v2037_v51  ;;  %v1975_v18 = vrot.slane %v1961_v60, %v2729_v48 }
 0x35f   :  { %v2083_v10 = vcombine.low %v2074_v32, %v2081_v4 }
 0x360   :  { %v1976_v21 = vcombine.low %v1968_v44, %v1975_v18 }
 0x361   :  { %v2097_v12 = vrot.slane %v2083_v10, %v2729_v48 }
 0x362   :  { %2200 = vst [vmem:[%s3221_s7 + $0x4] ss:$8 sm:$0xf] %v1976_v21  ;;  %2201 = vst [vmem:[%s3221_s7 + $0x4] ss:$8 sm:$0xf0] %v1976_v21 }
 0x363   :  { %v2098_v46 = vcombine.low %v2090_v20, %v2097_v12 }
 0x365   :  { %2204 = vst [vmem:[%s3221_s7 + $0x6] ss:$8 sm:$0xf] %v2098_v46  ;;  %2205 = vst [vmem:[%s3221_s7 + $0x6] ss:$8 sm:$0xf0] %v2098_v46 }

</bundles_post_ra>
